<compile_context>
chip_gen: v6e
topology: v6e:2x2x1
jax: 0.10.0
libtpu: 0.0.40
codegen_flags: <defaults>
</compile_context>

<pallas_src>
import jax
import jax.numpy as jnp
from jax import lax
from jax.experimental import pallas as pl
from jax.experimental.pallas import tpu as pltpu

EPS = 1e-5            # PyTorch BatchNorm default eps
C = 20                # channels of conv3/conv4
H = W = 4             # spatial size implied by x.view(-1, 320)
K = 5                 # conv kernel size
FEAT = C * H * W      # 320
FC1 = 50
FC2 = 10

# Lane-dense padded sizes used inside the kernel (output side of each matmul).
FEAT_P = 384          # 3 x 128 lanes
FC1_P = 128
FC2_P = 128
NEG = -1e30           # shift for padded logit columns -> exp() underflows to 0


def _round_up(a, b):
    return (a + b - 1) // b * b


# ----------------------------------------------------------------------------
# Glue: lower a padded 5x5 conv on a 4x4 image to a dense (320, 320) matmul.
# ----------------------------------------------------------------------------
def conv_as_matmul(w):
    """w: (O, C, 5, 5) conv weight (OIHW) -> M: (C*H*W, O*H*W).

    conv(x)[n, o, ho, wo] == (x.reshape(N, C*H*W) @ M)[n, o*H*W + ho*W + wo]
    for a stride-1, padding-2 convolution on a (H, W) = (4, 4) image.
    """
    hi = jnp.arange(H)
    ho = jnp.arange(H)
    wi = jnp.arange(W)
    wo = jnp.arange(W)
    dh = hi[:, None] - ho[None, :] + K // 2          # (H, H) kernel row index
    dw = wi[:, None] - wo[None, :] + K // 2          # (W, W) kernel col index
    vh = (dh >= 0) & (dh < K)
    vw = (dw >= 0) & (dw < K)
    # g[o, c, hi, ho, wi, wo] = w[o, c, dh(hi,ho), dw(wi,wo)]
    g = w[:, :, jnp.clip(dh, 0, K - 1)[:, :, None, None],
               jnp.clip(dw, 0, K - 1)[None, None, :, :]]
    mask = (vh[:, :, None, None] & vw[None, None, :, :]).astype(w.dtype)
    g = g * mask[None, None]
    # (o, c, hi, ho, wi, wo) -> (c, hi, wi, o, ho, wo), then flatten both halves
    return jnp.transpose(g, (1, 2, 4, 0, 3, 5)).reshape(C * H * W, -1)


# ----------------------------------------------------------------------------
# The Pallas kernel: whole forward pass for one batch tile.  All matmuls are
# bf16 on the MXU with f32 accumulation; BN scales are pre-folded into the
# weights, so each layer is matmul + shift + relu.
# ----------------------------------------------------------------------------
def _net_kernel(x_ref, m3_ref, t3_ref, m4_ref, t4_ref,
                w1_ref, t1_ref, w2_ref, t2_ref, out_ref):
    # x = F.relu(x)  — relu in f32 (commutes with the cast; avoids bf16 VPU on
    # v5e), then cast to bf16 exactly once for the MXU.
    h = jnp.maximum(x_ref[...], 0.0).astype(jnp.bfloat16)
    # x = F.relu(conv3_bn(conv3(x)))   (conv lowered to a (320, 384) matmul)
    h = jnp.dot(h, m3_ref[...], preferred_element_type=jnp.float32)
    h = jnp.maximum(h + t3_ref[...], 0.0).astype(jnp.bfloat16)
    # x = F.relu(conv4_bn(conv4(x)))
    h = jnp.dot(h, m4_ref[...], preferred_element_type=jnp.float32)
    h = jnp.maximum(h + t4_ref[...], 0.0).astype(jnp.bfloat16)
    # x = x.view(-1, 320): already in that layout (cols 320..383 are exactly 0)
    # x = F.relu(fc1_bn(fc1(x)))
    h = jnp.dot(h, w1_ref[...], preferred_element_type=jnp.float32)
    h = jnp.maximum(h + t1_ref[...], 0.0).astype(jnp.bfloat16)
    # TODO(synk): F.dropout is identity here (inference semantics); training-mode
    # dropout would use pltpu.prng_seed / pltpu.prng_random_bits masking.
    # x = fc2_bn(fc2(x))   (padded logit columns carry a -1e30 shift)
    z = jnp.dot(h, w2_ref[...], preferred_element_type=jnp.float32) + t2_ref[...]
    # F.log_softmax over the class axis, in f32 (padded columns give exp == 0)
    z = z - jnp.max(z, axis=-1, keepdims=True)
    z = z - jnp.log(jnp.sum(jnp.exp(z), axis=-1, keepdims=True))
    # Write only the 10 real classes (block is (tn, 10); tiny masked store).
    out_ref[...] = z[:, :FC2]


def net_fc_part_forward(x_nchw, kparams, *, block_rows=1024):
    """x_nchw: (N, 20, 4, 4) float32 -> (N, 10) log-probabilities."""
    m3, t3, m4, t4, w1, t1, w2, t2 = kparams
    n = x_nchw.shape[0]
    # Free view (contiguous NCHW); relu / bf16 cast happen inside the kernel.
    x = x_nchw.reshape(n, FEAT)

    # >= 4 grid steps (>= 2 per TensorCore on v7x megacore) so the x DMA and the
    # output writeback are pipelined; tn a multiple of 16 (bf16 row packing).
    target_steps = 4
    tn = min(block_rows, max(16, _round_up(pl.cdiv(n, target_steps), 16)))
    n_pad = _round_up(n, tn)
    if n_pad != n:                       # ragged batches only
        x = jnp.pad(x, ((0, n_pad - n), (0, 0)))
    grid = (n_pad // tn,)

    const2 = lambda i: (0, 0)
    wspec = lambda a: pl.BlockSpec(a.shape, const2)   # resident across grid steps

    weight_bytes = sum(int(a.size) * a.dtype.itemsize for a in kparams)
    cost = pl.CostEstimate(
        flops=int(2 * n_pad * (FEAT * FEAT_P + FEAT_P * FEAT_P
                               + FEAT_P * FC1_P + FC1_P * FC2_P)),
        transcendentals=int(n_pad * (FC2_P + 1)),
        bytes_accessed=int(x.size * 4 + n_pad * FC2 * 4 + weight_bytes),
    )

    out = pl.pallas_call(
        _net_kernel,
        out_shape=jax.ShapeDtypeStruct((n_pad, FC2), jnp.float32),
        grid=grid,
        in_specs=[pl.BlockSpec((tn, FEAT), lambda i: (i, 0)),   # 320 == full dim
                  wspec(m3), wspec(t3), wspec(m4), wspec(t4),
                  wspec(w1), wspec(t1), wspec(w2), wspec(t2)],
        out_specs=pl.BlockSpec((tn, FC2), lambda i: (i, 0)),    # 10 == full dim
        compiler_params=pltpu.CompilerParams(
            dimension_semantics=("parallel",),        # megacore shard on v7x
            vmem_limit_bytes=32 * 1024 * 1024),
        cost_estimate=cost,
    )(x, m3, t3, m4, t4, w1, t1, w2, t2)
    return out if n_pad == n else out[:n]


# ----------------------------------------------------------------------------
# Deterministic synthetic parameters (shapes from NetFCPart.__init__).
# ----------------------------------------------------------------------------
def init_params(key):
    ks = jax.random.split(key, 24)
    nrm = lambda k, shape, s: jax.random.normal(k, shape, jnp.float32) * s
    uni = lambda k, shape: jax.random.uniform(k, shape, jnp.float32, 0.5, 1.5)
    return dict(
        conv3_w=nrm(ks[0], (C, C, K, K), 0.05), conv3_b=nrm(ks[1], (C,), 0.05),
        bn3_g=uni(ks[2], (C,)), bn3_b=nrm(ks[3], (C,), 0.1),
        bn3_m=nrm(ks[4], (C,), 0.1), bn3_v=uni(ks[5], (C,)),
        conv4_w=nrm(ks[6], (C, C, K, K), 0.05), conv4_b=nrm(ks[7], (C,), 0.05),
        bn4_g=uni(ks[8], (C,)), bn4_b=nrm(ks[9], (C,), 0.1),
        bn4_m=nrm(ks[10], (C,), 0.1), bn4_v=uni(ks[11], (C,)),
        fc1_w=nrm(ks[12], (FC1, FEAT), 0.05), fc1_b=nrm(ks[13], (FC1,), 0.05),
        bnf1_g=uni(ks[14], (FC1,)), bnf1_b=nrm(ks[15], (FC1,), 0.1),
        bnf1_m=nrm(ks[16], (FC1,), 0.1), bnf1_v=uni(ks[17], (FC1,)),
        fc2_w=nrm(ks[18], (FC2, FC1), 0.05), fc2_b=nrm(ks[19], (FC2,), 0.05),
        bnf2_g=uni(ks[20], (FC2,)), bnf2_b=nrm(ks[21], (FC2,), 0.1),
        bnf2_m=nrm(ks[22], (FC2,), 0.1), bnf2_v=uni(ks[23], (FC2,)),
    )


def build_kernel_params(p):
    """Fold conv-bias + BN (running stats) into weights (scale) and shifts,
    lower convs to dense matmuls, lane-pad the OUTPUT axes, cast to bf16.
    m3 keeps K=320 (no zero K-rows); everything downstream is 384/128 wide."""
    def fold(bias, g, b, m, v):
        scale = g / jnp.sqrt(v + EPS)
        shift = (bias - m) * scale + b
        return scale, shift

    def pad2(a, rows, cols, fill=0.0):
        out = jnp.full((rows, cols), fill, jnp.float32)
        return out.at[:a.shape[0], :a.shape[1]].set(a)

    # conv3 + conv3_bn : (320, 384)
    s3, t3 = fold(p["conv3_b"], p["bn3_g"], p["bn3_b"], p["bn3_m"], p["bn3_v"])
    m3 = conv_as_matmul(p["conv3_w"]) * jnp.repeat(s3, H * W)[None, :]
    m3p = pad2(m3, FEAT, FEAT_P).astype(jnp.bfloat16)
    t3p = pad2(jnp.repeat(t3, H * W)[None, :], 1, FEAT_P)

    # conv4 + conv4_bn : (384, 384)  (rows 320..383 only ever see zero activations)
    s4, t4 = fold(p["conv4_b"], p["bn4_g"], p["bn4_b"], p["bn4_m"], p["bn4_v"])
    m4 = conv_as_matmul(p["conv4_w"]) * jnp.repeat(s4, H * W)[None, :]
    m4p = pad2(m4, FEAT_P, FEAT_P).astype(jnp.bfloat16)
    t4p = pad2(jnp.repeat(t4, H * W)[None, :], 1, FEAT_P)

    # fc1 + fc1_bn : (384, 128)
    s1, t1 = fold(p["fc1_b"], p["bnf1_g"], p["bnf1_b"], p["bnf1_m"], p["bnf1_v"])
    w1 = p["fc1_w"].T * s1[None, :]
    w1p = pad2(w1, FEAT_P, FC1_P).astype(jnp.bfloat16)
    t1p = pad2(t1[None, :], 1, FC1_P)

    # fc2 + fc2_bn : (128, 128)  (padded logit columns get -1e30 shift)
    s2, t2 = fold(p["fc2_b"], p["bnf2_g"], p["bnf2_b"], p["bnf2_m"], p["bnf2_v"])
    w2 = p["fc2_w"].T * s2[None, :]
    w2p = pad2(w2, FC1_P, FC2_P).astype(jnp.bfloat16)
    t2p = pad2(t2[None, :], 1, FC2_P, fill=NEG)

    return (m3p, t3p, m4p, t4p, w1p, t1p, w2p, t2p)


# ----------------------------------------------------------------------------
# References.
# ----------------------------------------------------------------------------
def quantized_reference(x_nchw, kp):
    """Pure-JAX mirror of the exact kernel math (same bf16 casts / folding).
    Used for a tight correctness check of the Pallas lowering."""
    m3, t3, m4, t4, w1, t1, w2, t2 = kp
    n = x_nchw.shape[0]
    x = x_nchw.reshape(n, FEAT)
    h = jnp.maximum(x, 0.0).astype(jnp.bfloat16)
    h = jnp.dot(h, m3, preferred_element_type=jnp.float32)
    h = jnp.maximum(h + t3, 0.0).astype(jnp.bfloat16)
    h = jnp.dot(h, m4, preferred_element_type=jnp.float32)
    h = jnp.maximum(h + t4, 0.0).astype(jnp.bfloat16)
    h = jnp.dot(h, w1, preferred_element_type=jnp.float32)
    h = jnp.maximum(h + t1, 0.0).astype(jnp.bfloat16)
    z = jnp.dot(h, w2, preferred_element_type=jnp.float32) + t2
    z = z - jnp.max(z, axis=-1, keepdims=True)
    z = z - jnp.log(jnp.sum(jnp.exp(z), axis=-1, keepdims=True))
    return z[:, :FC2]


def reference_forward(x, p):
    """Full-precision (f32) mirror of the PyTorch forward, eval mode."""
    def conv(y, w, b):
        out = lax.conv_general_dilated(
            y, w, window_strides=(1, 1), padding=((2, 2), (2, 2)),
            dimension_numbers=("NCHW", "OIHW", "NCHW"),
            precision=lax.Precision.HIGHEST)
        return out + b[None, :, None, None]

    def bn2d(y, g, b, m, v):
        sc = (g / jnp.sqrt(v + EPS))[None, :, None, None]
        return (y - m[None, :, None, None]) * sc + b[None, :, None, None]

    def bn1d(y, g, b, m, v):
        return (y - m) * (g / jnp.sqrt(v + EPS)) + b

    x = jax.nn.relu(x)
    x = jax.nn.relu(bn2d(conv(x, p["conv3_w"], p["conv3_b"]),
                         p["bn3_g"], p["bn3_b"], p["bn3_m"], p["bn3_v"]))
    x = jax.nn.relu(bn2d(conv(x, p["conv4_w"], p["conv4_b"]),
                         p["bn4_g"], p["bn4_b"], p["bn4_m"], p["bn4_v"]))
    x = x.reshape(-1, FEAT)
    x = jax.nn.relu(bn1d(jnp.dot(x, p["fc1_w"].T, precision=lax.Precision.HIGHEST)
                         + p["fc1_b"],
                         p["bnf1_g"], p["bnf1_b"], p["bnf1_m"], p["bnf1_v"]))
    x = bn1d(jnp.dot(x, p["fc2_w"].T, precision=lax.Precision.HIGHEST) + p["fc2_b"],
             p["bnf2_g"], p["bnf2_b"], p["bnf2_m"], p["bnf2_v"])
    return jax.nn.log_softmax(x, axis=-1)


if __name__ == "__main__":
    key = jax.random.PRNGKey(0)
    pkey, xkey = jax.random.split(key)
    params = init_params(pkey)
    kparams = build_kernel_params(params)

    N = 512
    x = jax.random.normal(xkey, (N, C, H, W), jnp.float32)  # NCHW like PyTorch

    # Default call: tn heuristic now yields tn=128 -> grid=(4,) (pipelined,
    # megacore-shardable), with no wrapper-side pad/cast pass.
    out = jax.block_until_ready(net_fc_part_forward(x, kparams))
    assert out.shape == (N, FC2)

    # Tight check: kernel vs identical-math bf16 JAX reference.
    qref = quantized_reference(x, kparams)
    dq = jnp.max(jnp.abs(out - qref))
    if not jnp.allclose(out, qref, atol=1e-3, rtol=1e-3):
        raise AssertionError(f"Pallas kernel mismatch vs quantized reference, max|diff|={dq}")

    # Loose semantic check: kernel (bf16 MXU) vs full f32 PyTorch-mirror reference.
    ref = reference_forward(x, params)
    df = jnp.max(jnp.abs(out - ref))
    if not (df < 0.2 and jnp.mean(jnp.abs(out - ref)) < 0.05):
        raise AssertionError(f"Pallas kernel drifted from f32 reference, max|diff|={df}")

    # Ragged batch (exercises row padding + output row slice).
    out2 = jax.block_until_ready(net_fc_part_forward(x[:37], kparams, block_rows=128))
    assert out2.shape == (37, FC2)
    if not jnp.allclose(out2, qref[:37], atol=1e-3, rtol=1e-3):
        raise AssertionError("Pallas kernel mismatch on ragged batch")

    print("KERNEL_OK")
</pallas_src>

<mosaic_0001>
module attributes {stable_mosaic.version = 11 : i64} {
  func.func @_net_kernel(%arg0: i32, %arg1: memref<128x320xf32, #tpu.memory_space<vmem>>, %arg2: memref<320x384xbf16, #tpu.memory_space<vmem>>, %arg3: memref<1x384xf32, #tpu.memory_space<vmem>>, %arg4: memref<384x384xbf16, #tpu.memory_space<vmem>>, %arg5: memref<1x384xf32, #tpu.memory_space<vmem>>, %arg6: memref<384x128xbf16, #tpu.memory_space<vmem>>, %arg7: memref<1x128xf32, #tpu.memory_space<vmem>>, %arg8: memref<128x128xbf16, #tpu.memory_space<vmem>>, %arg9: memref<1x128xf32, #tpu.memory_space<vmem>>, %arg10: memref<128x10xf32, #tpu.memory_space<vmem>>) attributes {dimension_semantics = [#tpu.dimension_semantics<parallel>], iteration_bounds = array<i64: 4>, scalar_prefetch = 0 : i64, scratch_operands = 0 : i64, tpu.core_type = #tpu.core_type<tc>, window_params = [{transform_indices = @transform_0, window_bounds = array<i64: 128, 320>}, {pipeline_mode = #tpu.pipeline_mode<synchronous>, transform_indices = @transform_1, window_bounds = array<i64: 320, 384>}, {pipeline_mode = #tpu.pipeline_mode<synchronous>, transform_indices = @transform_2, window_bounds = array<i64: 1, 384>}, {pipeline_mode = #tpu.pipeline_mode<synchronous>, transform_indices = @transform_3, window_bounds = array<i64: 384, 384>}, {pipeline_mode = #tpu.pipeline_mode<synchronous>, transform_indices = @transform_4, window_bounds = array<i64: 1, 384>}, {pipeline_mode = #tpu.pipeline_mode<synchronous>, transform_indices = @transform_5, window_bounds = array<i64: 384, 128>}, {pipeline_mode = #tpu.pipeline_mode<synchronous>, transform_indices = @transform_6, window_bounds = array<i64: 1, 128>}, {pipeline_mode = #tpu.pipeline_mode<synchronous>, transform_indices = @transform_7, window_bounds = array<i64: 128, 128>}, {pipeline_mode = #tpu.pipeline_mode<synchronous>, transform_indices = @transform_8, window_bounds = array<i64: 1, 128>}, {transform_indices = @transform_9, window_bounds = array<i64: 128, 10>}]} {
    %c0 = arith.constant 0 : index
    %c0_0 = arith.constant 0 : index
    %0 = vector.load %arg1[%c0, %c0_0] : memref<128x320xf32, #tpu.memory_space<vmem>>, vector<128x320xf32>
    %cst = arith.constant 0.000000e+00 : f32
    %1 = vector.broadcast %cst : f32 to vector<128x320xf32>
    %2 = arith.maximumf %0, %1 : vector<128x320xf32>
    %3 = arith.truncf %2 : vector<128x320xf32> to vector<128x320xbf16>
    %c0_1 = arith.constant 0 : index
    %c0_2 = arith.constant 0 : index
    %4 = vector.load %arg2[%c0_1, %c0_2] : memref<320x384xbf16, #tpu.memory_space<vmem>>, vector<320x384xbf16>
    %cst_3 = arith.constant dense<0.000000e+00> : vector<128x384xf32>
    %5 = tpu.matmul %3, %4, %cst_3 {dimension_numbers = #tpu.dot_dimension_numbers<[1], [0], [0], [1], [0, 0, 1, 1], [], []>} : vector<128x320xbf16>, vector<320x384xbf16>, vector<128x384xf32> -> vector<128x384xf32>
    %c0_4 = arith.constant 0 : index
    %c0_5 = arith.constant 0 : index
    %6 = vector.load %arg3[%c0_4, %c0_5] : memref<1x384xf32, #tpu.memory_space<vmem>>, vector<1x384xf32>
    %7 = vector.broadcast %6 : vector<1x384xf32> to vector<128x384xf32>
    %8 = arith.addf %5, %7 : vector<128x384xf32>
    %cst_6 = arith.constant 0.000000e+00 : f32
    %9 = vector.broadcast %cst_6 : f32 to vector<128x384xf32>
    %10 = arith.maximumf %8, %9 : vector<128x384xf32>
    %11 = arith.truncf %10 : vector<128x384xf32> to vector<128x384xbf16>
    %c0_7 = arith.constant 0 : index
    %c0_8 = arith.constant 0 : index
    %12 = vector.load %arg4[%c0_7, %c0_8] : memref<384x384xbf16, #tpu.memory_space<vmem>>, vector<384x384xbf16>
    %cst_9 = arith.constant dense<0.000000e+00> : vector<128x384xf32>
    %13 = tpu.matmul %11, %12, %cst_9 {dimension_numbers = #tpu.dot_dimension_numbers<[1], [0], [0], [1], [0, 0, 1, 1], [], []>} : vector<128x384xbf16>, vector<384x384xbf16>, vector<128x384xf32> -> vector<128x384xf32>
    %c0_10 = arith.constant 0 : index
    %c0_11 = arith.constant 0 : index
    %14 = vector.load %arg5[%c0_10, %c0_11] : memref<1x384xf32, #tpu.memory_space<vmem>>, vector<1x384xf32>
    %15 = vector.broadcast %14 : vector<1x384xf32> to vector<128x384xf32>
    %16 = arith.addf %13, %15 : vector<128x384xf32>
    %cst_12 = arith.constant 0.000000e+00 : f32
    %17 = vector.broadcast %cst_12 : f32 to vector<128x384xf32>
    %18 = arith.maximumf %16, %17 : vector<128x384xf32>
    %19 = arith.truncf %18 : vector<128x384xf32> to vector<128x384xbf16>
    %c0_13 = arith.constant 0 : index
    %c0_14 = arith.constant 0 : index
    %20 = vector.load %arg6[%c0_13, %c0_14] : memref<384x128xbf16, #tpu.memory_space<vmem>>, vector<384x128xbf16>
    %cst_15 = arith.constant dense<0.000000e+00> : vector<128x128xf32>
    %21 = tpu.matmul %19, %20, %cst_15 {dimension_numbers = #tpu.dot_dimension_numbers<[1], [0], [0], [1], [0, 0, 1, 1], [], []>} : vector<128x384xbf16>, vector<384x128xbf16>, vector<128x128xf32> -> vector<128x128xf32>
    %c0_16 = arith.constant 0 : index
    %c0_17 = arith.constant 0 : index
    %22 = vector.load %arg7[%c0_16, %c0_17] : memref<1x128xf32, #tpu.memory_space<vmem>>, vector<1x128xf32>
    %23 = vector.broadcast %22 : vector<1x128xf32> to vector<128x128xf32>
    %24 = arith.addf %21, %23 : vector<128x128xf32>
    %cst_18 = arith.constant 0.000000e+00 : f32
    %25 = vector.broadcast %cst_18 : f32 to vector<128x128xf32>
    %26 = arith.maximumf %24, %25 : vector<128x128xf32>
    %27 = arith.truncf %26 : vector<128x128xf32> to vector<128x128xbf16>
    %c0_19 = arith.constant 0 : index
    %c0_20 = arith.constant 0 : index
    %28 = vector.load %arg8[%c0_19, %c0_20] : memref<128x128xbf16, #tpu.memory_space<vmem>>, vector<128x128xbf16>
    %cst_21 = arith.constant dense<0.000000e+00> : vector<128x128xf32>
    %29 = tpu.matmul %27, %28, %cst_21 {dimension_numbers = #tpu.dot_dimension_numbers<[1], [0], [0], [1], [0, 0, 1, 1], [], []>} : vector<128x128xbf16>, vector<128x128xbf16>, vector<128x128xf32> -> vector<128x128xf32>
    %c0_22 = arith.constant 0 : index
    %c0_23 = arith.constant 0 : index
    %30 = vector.load %arg9[%c0_22, %c0_23] : memref<1x128xf32, #tpu.memory_space<vmem>>, vector<1x128xf32>
    %31 = vector.broadcast %30 : vector<1x128xf32> to vector<128x128xf32>
    %32 = arith.addf %29, %31 : vector<128x128xf32>
    %cst_24 = arith.constant dense<0xFF800000> : vector<128xf32>
    %33 = vector.multi_reduction <maximumf>, %32, %cst_24 [1] : vector<128x128xf32> to vector<128xf32>
    %34 = vector.shape_cast %33 : vector<128xf32> to vector<128x1xf32>
    %35 = vector.broadcast %34 : vector<128x1xf32> to vector<128x128xf32>
    %36 = arith.subf %32, %35 : vector<128x128xf32>
    %37 = math.exp %36 : vector<128x128xf32>
    %cst_25 = arith.constant dense<0.000000e+00> : vector<128xf32>
    %38 = vector.multi_reduction <add>, %37, %cst_25 [1] : vector<128x128xf32> to vector<128xf32>
    %39 = vector.shape_cast %38 : vector<128xf32> to vector<128x1xf32>
    %40 = math.log %39 : vector<128x1xf32>
    %41 = vector.broadcast %40 : vector<128x1xf32> to vector<128x128xf32>
    %42 = arith.subf %36, %41 : vector<128x128xf32>
    %43 = vector.extract_strided_slice %42 {offsets = [0, 0], sizes = [128, 10], strides = [1, 1]} : vector<128x128xf32> to vector<128x10xf32>
    %c0_26 = arith.constant 0 : index
    %c0_27 = arith.constant 0 : index
    %44 = vector.load %arg10[%c0_26, %c0_27] : memref<128x10xf32, #tpu.memory_space<vmem>>, vector<128x10xf32>
    tpu.vector_store %arg10[%c0_26, %c0_27], %43 {strides = array<i32>} : memref<128x10xf32, #tpu.memory_space<vmem>>, vector<128x10xf32>,
    return
  }
  func.func @transform_0(%arg0: i32) -> (i32, i32) {
    %c0_i32 = arith.constant 0 : i32
    %c0_i32_0 = arith.constant 0 : i32
    return %arg0, %c0_i32 : i32, i32
  }
  func.func @transform_1(%arg0: i32) -> (i32, i32) {
    %c0_i32 = arith.constant 0 : i32
    %c0_i32_0 = arith.constant 0 : i32
    %c0_i32_1 = arith.constant 0 : i32
    return %c0_i32, %c0_i32_0 : i32, i32
  }
  func.func @transform_2(%arg0: i32) -> (i32, i32) {
    %c0_i32 = arith.constant 0 : i32
    %c0_i32_0 = arith.constant 0 : i32
    %c0_i32_1 = arith.constant 0 : i32
    return %c0_i32, %c0_i32_0 : i32, i32
  }
  func.func @transform_3(%arg0: i32) -> (i32, i32) {
    %c0_i32 = arith.constant 0 : i32
    %c0_i32_0 = arith.constant 0 : i32
    %c0_i32_1 = arith.constant 0 : i32
    return %c0_i32, %c0_i32_0 : i32, i32
  }
  func.func @transform_4(%arg0: i32) -> (i32, i32) {
    %c0_i32 = arith.constant 0 : i32
    %c0_i32_0 = arith.constant 0 : i32
    %c0_i32_1 = arith.constant 0 : i32
    return %c0_i32, %c0_i32_0 : i32, i32
  }
  func.func @transform_5(%arg0: i32) -> (i32, i32) {
    %c0_i32 = arith.constant 0 : i32
    %c0_i32_0 = arith.constant 0 : i32
    %c0_i32_1 = arith.constant 0 : i32
    return %c0_i32, %c0_i32_0 : i32, i32
  }
  func.func @transform_6(%arg0: i32) -> (i32, i32) {
    %c0_i32 = arith.constant 0 : i32
    %c0_i32_0 = arith.constant 0 : i32
    %c0_i32_1 = arith.constant 0 : i32
    return %c0_i32, %c0_i32_0 : i32, i32
  }
  func.func @transform_7(%arg0: i32) -> (i32, i32) {
    %c0_i32 = arith.constant 0 : i32
    %c0_i32_0 = arith.constant 0 : i32
    %c0_i32_1 = arith.constant 0 : i32
    return %c0_i32, %c0_i32_0 : i32, i32
  }
  func.func @transform_8(%arg0: i32) -> (i32, i32) {
    %c0_i32 = arith.constant 0 : i32
    %c0_i32_0 = arith.constant 0 : i32
    %c0_i32_1 = arith.constant 0 : i32
    return %c0_i32, %c0_i32_0 : i32, i32
  }
  func.func @transform_9(%arg0: i32) -> (i32, i32) {
    %c0_i32 = arith.constant 0 : i32
    %c0_i32_0 = arith.constant 0 : i32
    return %arg0, %c0_i32 : i32, i32
  }
}

</mosaic_0001>

<bundles_post_ra>
// kernel: tpu_custom_call.1
= control target key start
LH: loop header
LB: loop body
LE: loop exit
PB: predicated region body
PF: predicated region fallthrough
CT: control target
= control target key end

     0   :  { %s4123_s30 = smov 0   ;;  %s5462_s0 = inlined_call_operand.vmem [shape: f32[512,320], index: 0, kind: input, shape index: {}]   ;;  %s5463_s1 = inlined_call_operand.vmem [shape: bf16[320,384], index: 1, kind: input, shape index: {}]   ;;  %s5464_s2 = inlined_call_operand.vmem [shape: f32[1,384], index: 2, kind: input, shape index: {}]   ;;  %s5465_s3 = inlined_call_operand.vmem [shape: bf16[384,384], index: 3, kind: input, shape index: {}]   ;;  %s5466_s4 = inlined_call_operand.vmem [shape: f32[1,384], index: 4, kind: input, shape index: {}]   ;;  %s5467_s5 = inlined_call_operand.vmem [shape: bf16[384,128], index: 5, kind: input, shape index: {}]   ;;  %s5468_s6 = inlined_call_operand.vmem [shape: f32[1,128], index: 6, kind: input, shape index: {}]   ;;  %s5469_s7 = inlined_call_operand.vmem [shape: bf16[128,128], index: 7, kind: input, shape index: {}]   ;;  %s5470_s8 = inlined_call_operand.vmem [shape: f32[1,128], index: 8, kind: input, shape index: {}]   ;;  %s5471_s9 = inlined_call_operand.vmem [shape: f32[512,10], index: 9, kind: output, shape index: {}]  }
   0x1 LB: > { %s3201_s10 = sadd.s32 4294967295, %s4070_s30   ;;  %p3205_p0 = scmp.ge.s32.totalorder %s4070_s30, 1  ;;  %s4070_s30 = sphi %s4123_s30, %s19_s30  }
   0x2   : > { %p289_p1 = scmp.lt.s32.totalorder %s4070_s30, 5 }
   0x4   : > { %p290_p2 = pnand %p3205_p0, %p289_p1 }
   0x5   : > { %s3206_s19 = sshll.u32 (!%p290_p2), %s3201_s10, 4 }
   0x6   : > { %293 = sbr.rel (%p290_p2) target bundleno = 1363 (0x553), region = 56  ;;  %p327_p3 = scmp.lt.s32.totalorder (!%p290_p2), %s3206_s19, 63 }
   0xb   : > { %v3792_v0 = vld [vmem:[%s5463_s1 + $0xac] ss:$12 sps:$4 sm:$0xff]   ;;  %v3794_v1 = vld [vmem:[%s5463_s1 + $0xa8] ss:$12 sps:$4 sm:$0xff]   ;;  %v4072_v2 = vmov 0   ;;  %s5473_s19 = smov (!%p327_p3, %s3206_s19), 63 }
   0xc   : > { %1047 = vmatprep.mubr.bf16.mxu1 %v4072_v2  ;;  %902 = vmatprep.subr.bf16.mxu0 %v3792_v0  ;;  %v3795_v3 = vld [vmem:[%s5463_s1 + $0x94] ss:$12 sps:$4 sm:$0xff]   ;;  %v3797_v4 = vld [vmem:[%s5463_s1 + $0x90] ss:$12 sps:$4 sm:$0xff]   ;;  %v3800_v6 = vld [vmem:[%s5463_s1 + $0x78] ss:$12 sps:$4 sm:$0xff]  }
   0xd   : > { %903 = vmatpush1.bf16.msra.mxu0 %v3794_v1  ;;  %v3798_v5 = vld [vmem:[%s5463_s1 + $0x7c] ss:$12 sps:$4 sm:$0xff]   ;;  %v3801_v7 = vld [vmem:[%s5463_s1 + $0x64] ss:$12 sps:$4 sm:$0xff]   ;;  %v3803_v8 = vld [vmem:[%s5463_s1 + $0x60] ss:$12 sps:$4 sm:$0xff]  }
   0xe   : > { %904 = vmatprep.subr.bf16.mxu0 %v3795_v3  ;;  %v3816_v9 = vld [vmem:[%s5463_s1 + $0x1cc] ss:$12 sps:$4 sm:$0xff]   ;;  %v3820_v11 = vld [vmem:[%s5463_s1 + $0x1c8] ss:$12 sps:$4 sm:$0xff]   ;;  %s3782_s16 = smul.u32 24, %s5473_s19  ;;  %vm877_vm0 = vcmask 523264  }
   0xf   : > { %v3804_v10 = vld [vmem:[%s5463_s1 + $0x4c] ss:$12 sps:$4 sm:$0xff]   ;;  %1023 = vmatprep.subr.bf16.mxu1 %v3816_v9  ;;  %v3822_v12 = vld [vmem:[%s5463_s1 + $0x1b4] ss:$12 sps:$4 sm:$0xff]   ;;  %v3826_v15 = vld [vmem:[%s5463_s1 + $0x1b0] ss:$12 sps:$4 sm:$0xff]  }
  0x10   : > { %1024 = vmatpush1.bf16.msra.mxu1 %v3820_v11  ;;  %v3806_v13 = vld [vmem:[%s5463_s1 + $0x48] ss:$12 sps:$4 sm:$0xff]   ;;  %v3809_v17 = vld [vmem:[%s5463_s1 + $0x30] ss:$12 sps:$4 sm:$0xff]   ;;  %v3832_v18 = vld [vmem:[%s5463_s1 + $0x198] ss:$12 sps:$4 sm:$0xff]   ;;  %s4192_s12 = scalar_lea.vmem %s5462_s0, %s3782_s16 }
  0x11   : > { %905 = vmatpush1.bf16.msra.mxu0 %v3797_v4  ;;  %v3807_v14 = vld [vmem:[%s5463_s1 + $0x34] ss:$12 sps:$4 sm:$0xff]   ;;  %1025 = vmatprep.subr.bf16.mxu1 %v3822_v12  ;;  %v3828_v16 = vld [vmem:[%s5463_s1 + $0x19c] ss:$12 sps:$4 sm:$0xff]   ;;  %v3834_v19 = vld [vmem:[%s5463_s1 + $0x184] ss:$12 sps:$4 sm:$0xff]  }
  0x12   : > { %906 = vmatprep.subr.bf16.mxu0 %v3798_v5  ;;  %v3810_v20 = vld [vmem:[%s5463_s1 + $0x1c] ss:$12 sps:$4 sm:$0xff]   ;;  %v342_v21 = vld [vmem:[%s4192_s12 + $0x10] sm:$0xff]  ;;  %v3838_v23 = vld [vmem:[%s5463_s1 + $0x180] ss:$12 sps:$4 sm:$0xff]   ;;  %s3209_s14 = sshll.u32 %s5473_s19, 3 }
  0x13   : > { %v345_v22 = vld [vmem:[%s4192_s12 + $0x28] sm:$0xff]  ;;  %v390_v24 = vmax.f32 %v342_v21, 0.0  ;;  %v3812_v26 = vld [vmem:[%s5463_s1 + $0x18] ss:$12 sps:$4 sm:$0xff]   ;;  %v3851_v35 = vld [vmem:[%s5463_s1 + $0x170] ss:$12 sps:$4 sm:$0xff]  }
  0x14   : > { %1026 = vmatpush1.bf16.msra.mxu1 %v3826_v15  ;;  %v393_v25 = vmax.f32 %v345_v22, 0.0  ;;  %v3813_v27 = vld [vmem:[%s5463_s1 + $0x4] ss:$12 sps:$4 sm:$0xff]   ;;  %v351_v30 = vld [vmem:[%s4192_s12 + $0x58] sm:$0xff]  ;;  %v3815_v31 = vld [vmem:[%s5463_s1] ss:$12 sps:$4 sm:$0xff]  }
  0x15   : > { %907 = vmatpush1.bf16.msra.mxu0 %v3800_v6  ;;  %1027 = vmatprep.subr.bf16.mxu1 %v3828_v16  ;;  %v348_v28 = vld [vmem:[%s4192_s12 + $0x40] sm:$0xff]  ;;  %v3818_v32 = vld [vmem:[%s5463_s1 + $0x16c] ss:$12 sps:$4 sm:$0xff]   ;;  %v399_v34 = vmax.f32 %v351_v30, 0.0  ;;  %v3853_v36 = vld [vmem:[%s5463_s1 + $0xb0] ss:$12 sps:$4 sm:$0xff]  }
  0x16   : > { %908 = vmatprep.subr.bf16.mxu0 %v3801_v7  ;;  %v4212_v29 = vpack.c.bf16 %v393_v25, %v390_v24  ;;  %v396_v33 = vmax.f32 %v348_v28, 0.0  ;;  %v341_v37 = vld [vmem:[%s4192_s12 + $0x8] sm:$0xff]  ;;  %v344_v38 = vld [vmem:[%s4192_s12 + $0x20] sm:$0xff]  ;;  %v354_v43 = vld [vmem:[%s4192_s12 + $0x70] sm:$0xff]  ;;  %vm3128_vm1 = vcmask 80896  }
  0x17   : > { %v3821_v39 = vld [vmem:[%s5463_s1 + $0x168] ss:$12 sps:$4 sm:$0xff]   ;;  %v389_v40 = vmax.f32 %v341_v37, 0.0  ;;  %v392_v41 = vmax.f32 %v344_v38, 0.0  ;;  %v3855_v47 = vld [vmem:[%s5463_s1 + $0x158] ss:$12 sps:$4 sm:$0xff]  }
  0x18   : > { %1028 = vmatpush1.bf16.msra.mxu1 %v3832_v18  ;;  %v3824_v42 = vld [vmem:[%s5463_s1 + $0x154] ss:$12 sps:$4 sm:$0xff]   ;;  %v4239_v44 = vpack.c.bf16 %v399_v34, %v396_v33  ;;  %v357_v46 = vld [vmem:[%s4192_s12 + $0x88] sm:$0xff]  ;;  %v3827_v48 = vld [vmem:[%s5463_s1 + $0x150] ss:$12 sps:$4 sm:$0xff]   ;;  %v402_v51 = vmax.f32 %v354_v43, 0.0 }
  0x19   : > { %909 = vmatpush1.bf16.msra.mxu0 %v3803_v8  ;;  %1029 = vmatprep.subr.bf16.mxu1 %v3834_v19  ;;  %v4241_v45 = vpack.c.bf16 %v392_v41, %v389_v40  ;;  %v3856_v49 = vld [vmem:[%s5463_s1 + $0x98] ss:$12 sps:$4 sm:$0xff]   ;;  %v3830_v50 = vld [vmem:[%s5463_s1 + $0x13c] ss:$12 sps:$4 sm:$0xff]   ;;  %v405_v52 = vmax.f32 %v357_v46, 0.0  ;;  %v366_v5 = vld [vmem:[%s4192_s12 + $0xd0] sm:$0xff] }
  0x1a   : > { %910 = vmatprep.subr.bf16.mxu0 %v3804_v10  ;;  %v3833_v53 = vld [vmem:[%s5463_s1 + $0x138] ss:$12 sps:$4 sm:$0xff]   ;;  %v3857_v54 = vld [vmem:[%s5463_s1 + $0x140] ss:$12 sps:$4 sm:$0xff]   ;;  %v3860_v62 = vld [vmem:[%s5463_s1 + $0x128] ss:$12 sps:$4 sm:$0xff]  }
  0x1b   : > { %934 = vmatprep.mubr.bf16.mxu0 %v4241_v45  ;;  %v3858_v55 = vld [vmem:[%s5463_s1 + $0x80] ss:$12 sps:$4 sm:$0xff]   ;;  %v3836_v56 = vld [vmem:[%s5463_s1 + $0x124] ss:$12 sps:$4 sm:$0xff]   ;;  %v4275_v58 = vpack.c.bf16 %v405_v52, %v402_v51  ;;  %v363_v60 = vld [vmem:[%s4192_s12 + $0xb8] sm:$0xff]  ;;  %v414_v15 = vmax.f32 %v366_v5, 0.0 }
  0x1c   : > { %1030 = vmatpush1.bf16.msra.mxu1 %v3838_v23  ;;  %v3839_v57 = vld [vmem:[%s5463_s1 + $0x120] ss:$12 sps:$4 sm:$0xff]   ;;  %v411_v0 = vmax.f32 %v363_v60, 0.0  ;;  %v3861_v1 = vld [vmem:[%s5463_s1 + $0x68] ss:$12 sps:$4 sm:$0xff]  }
  0x1d   : > { %911 = vmatpush1.bf16.msra.mxu0 %v3806_v13  ;;  %3394 = vmatprep.subr.bf16.mxu1 %v3851_v35  ;;  %v360_v59 = vld [vmem:[%s4192_s12 + $0xa0] sm:$0xff]  ;;  %v3840_v61 = vld [vmem:[%s5463_s1 + $0x10c] ss:$12 sps:$4 sm:$0xff]   ;;  %v3842_v3 = vld [vmem:[%s5463_s1 + $0x108] ss:$12 sps:$4 sm:$0xff]  }
  0x1e   : > { %912 = vmatprep.subr.bf16.mxu0 %v3807_v14  ;;  %v408_v63 = vmax.f32 %v360_v59, 0.0  ;;  %v3843_v4 = vld [vmem:[%s5463_s1 + $0xf4] ss:$12 sps:$4 sm:$0xff]   ;;  %v3862_v6 = vld [vmem:[%s5463_s1 + $0x110] ss:$12 sps:$4 sm:$0xff]   ;;  %v369_v8 = vld [vmem:[%s4192_s12 + $0xe8] sm:$0xff] }
  0x1f   : > { %3270 = vmatmul.mubr.msk.bf16.vlgmr.msra.gmra.mxu1 %vm877_vm0, %v4212_v29  ;;  %v3863_v9 = vld [vmem:[%s5463_s1 + $0x50] ss:$12 sps:$4 sm:$0xff]   ;;  %v340_v12 = vld [vmem:[%s4192_s12] sm:$0xff]  ;;  %v417_v16 = vmax.f32 %v369_v8, 0.0  ;;  %v3869_v34 = vld [vmem:[%s5463_s1 + $0xc8] ss:$12 sps:$4 sm:$0xff]  }
  0x20   : > { %1057 = vmatprep.mubr.bf16.mxu1 %v4072_v2  ;;  %3395 = vmatpush3.bf16.msra.mxu1 %v3853_v36  ;;  %v4301_v7 = vpack.c.bf16 %v411_v0, %v408_v63  ;;  %v3845_v10 = vld [vmem:[%s5463_s1 + $0xf0] ss:$12 sps:$4 sm:$0xff]   ;;  %v3866_v18 = vld [vmem:[%s5463_s1 + $0x38] ss:$12 sps:$4 sm:$0xff]   ;;  %v388_v22 = vmax.f32 %v340_v12, 0.0  ;;  %v349_v41 = vld [vmem:[%s4192_s12 + $0x48] sm:$0xff] }
  0x21   : > { %913 = vmatpush1.bf16.msra.mxu0 %v3809_v17  ;;  %3396 = vmatprep.subr.bf16.mxu1 %v3855_v47  ;;  %v3846_v11 = vld [vmem:[%s5463_s1 + $0xdc] ss:$12 sps:$4 sm:$0xff]   ;;  %v3865_v17 = vld [vmem:[%s5463_s1 + $0xf8] ss:$12 sps:$4 sm:$0xff]   ;;  %v3852_v24 = vld [vmem:[%s5463_s1 + $0xc0] ss:$12 sps:$4 sm:$0xff]  }
  0x22   : > { %914 = vmatprep.subr.bf16.mxu0 %v3810_v20  ;;  %v343_v13 = vld [vmem:[%s4192_s12 + $0x18] sm:$0xff]  ;;  %v350_v20 = vld [vmem:[%s4192_s12 + $0x50] sm:$0xff]  ;;  %v3867_v28 = vld [vmem:[%s5463_s1 + $0xe0] ss:$12 sps:$4 sm:$0xff]  }
  0x23   : > { %v347_v14 = vld [vmem:[%s4192_s12 + $0x38] sm:$0xff]  ;;  %v3849_v21 = vld [vmem:[%s5463_s1 + $0xc4] ss:$12 sps:$4 sm:$0xff]   ;;  %v391_v23 = vmax.f32 %v343_v13, 0.0  ;;  %v3868_v33 = vld [vmem:[%s5463_s1 + $0x20] ss:$12 sps:$4 sm:$0xff]  }
  0x24   : > { %3397 = vmatpush3.bf16.msra.mxu1 %v3856_v49  ;;  %v3848_v19 = vld [vmem:[%s5463_s1 + $0xd8] ss:$12 sps:$4 sm:$0xff]   ;;  %v395_v25 = vmax.f32 %v347_v14, 0.0  ;;  %v3854_v30 = vld [vmem:[%s5463_s1 + $0x1d0] ss:$12 sps:$4 sm:$0xff]   ;;  %v381_v51 = vld [vmem:[%s4192_s12 + $0x148] sm:$0xff] }
  0x25   : > { %915 = vmatpush1.bf16.msra.mxu0 %v3812_v26  ;;  %3398 = vmatprep.subr.bf16.mxu1 %v3857_v54  ;;  %v4335_v26 = vpack.c.bf16 %v417_v16, %v414_v15  ;;  %v4353_v37 = vpack.c.bf16 %v391_v23, %v388_v22  ;;  %v346_v38 = vld [vmem:[%s4192_s12 + $0x30] sm:$0xff]  ;;  %v356_v43 = vld [vmem:[%s4192_s12 + $0x80] sm:$0xff]  ;;  %v3874_v52 = vld [vmem:[%s5465_s3 + $0xac] ss:$12 sps:$4 sm:$0xff]   ;;  %v429_v59 = vmax.f32 %v381_v51, 0.0 }
  0x26   : > { %916 = vmatprep.subr.bf16.mxu0 %v3813_v27  ;;  %v372_v27 = vld [vmem:[%s4192_s12 + $0x100] sm:$0xff]  ;;  %v394_v49 = vmax.f32 %v346_v38, 0.0  ;;  %v404_v54 = vmax.f32 %v356_v43, 0.0  ;;  %v359_v63 = vld [vmem:[%s4192_s12 + $0x98] sm:$0xff]  ;;  %v362_v0 = vld [vmem:[%s4192_s12 + $0xb0] sm:$0xff] }
  0x27   : > { %3271 = vmatmul.mubr.msk.bf16.gmra.mxu1 %vm877_vm0, %v4239_v44  ;;  %v420_v35 = vmax.f32 %v372_v27, 0.0  ;;  %v3859_v46 = vld [vmem:[%s5463_s1 + $0x1b8] ss:$12 sps:$4 sm:$0xff]   ;;  %v361_v12 = vld [vmem:[%s4192_s12 + $0xa8] sm:$0xff]  ;;  %v370_v27 = vld [vmem:[%s4192_s12 + $0xf0] sm:$0xff] }
  0x28   : > { %1067 = vmatprep.mubr.bf16.mxu1 %v4072_v2  ;;  %3399 = vmatpush3.bf16.msra.mxu1 %v3858_v55  ;;  %v3864_v55 = vld [vmem:[%s5463_s1 + $0x1a0] ss:$12 sps:$4 sm:$0xff]   ;;  %v387_v8 = vld [vmem:[%s4192_s12 + $0x178] sm:$0xff]  ;;  %v409_v23 = vmax.f32 %v361_v12, 0.0  ;;  %v418_v43 = vmax.f32 %v370_v27, 0.0 }
  0x29   : > { %917 = vmatpush1.bf16.msra.mxu0 %v3815_v31  ;;  %3400 = vmatprep.subr.bf16.mxu1 %v3860_v62  ;;  %v398_v31 = vmax.f32 %v350_v20, 0.0  ;;  %v365_v13 = vld [vmem:[%s4192_s12 + $0xc8] sm:$0xff]  ;;  %v368_v14 = vld [vmem:[%s4192_s12 + $0xe0] sm:$0xff] }
  0x2a   : > { %918 = vmatprep.subr.bf16.mxu0 %v3818_v32  ;;  %v375_v32 = vld [vmem:[%s4192_s12 + $0x118] sm:$0xff]  ;;  %v364_v15 = vld [vmem:[%s4192_s12 + $0xc0] sm:$0xff]  ;;  %v3884_v12 = vld [vmem:[%s5465_s3 + $0x48] ss:$12 sps:$4 sm:$0xff]  }
  0x2b   : > { %v423_v36 = vmax.f32 %v375_v32, 0.0  ;;  %v4360_v40 = vpack.c.bf16 %v398_v31, %v395_v25  ;;  %v416_v31 = vmax.f32 %v368_v14, 0.0  ;;  %v412_v32 = vmax.f32 %v364_v15, 0.0  ;;  %v3892_v15 = vld [vmem:[%s5465_s3 + $0x1c] ss:$12 sps:$4 sm:$0xff]  }
  0x2c   : > { %3401 = vmatpush3.bf16.msra.mxu1 %v3861_v1  ;;  %v3871_v1 = vld [vmem:[%s5463_s1 + $0x188] ss:$12 sps:$4 sm:$0xff]   ;;  %v3907_v27 = vld [vmem:[%s5465_s3 + $0x124] ss:$12 sps:$4 sm:$0xff]  }
  0x2d   : > { %919 = vmatpush2.bf16.msra.mxu0 %v3821_v39  ;;  %3402 = vmatprep.subr.bf16.mxu1 %v3862_v6  ;;  %v3870_v39 = vld [vmem:[%s5463_s1 + $0x8] ss:$12 sps:$4 sm:$0xff]   ;;  %v4368_v47 = vpack.c.bf16 %v423_v36, %v420_v35  ;;  %v380_v35 = vld [vmem:[%s4192_s12 + $0x140] sm:$0xff] }
  0x2e   : > { %920 = vmatprep.subr.bf16.mxu0 %v3824_v42  ;;  %v353_v42 = vld [vmem:[%s4192_s12 + $0x68] sm:$0xff] }
  0x2f   : > { %3272 = vmatmul.mubr.msk.bf16.gmra.mxu1 %vm877_vm0, %v4275_v58 }
  0x30   : > { %1077 = vmatprep.mubr.bf16.mxu1 %v4072_v2  ;;  %3403 = vmatpush3.bf16.msra.mxu1 %v3863_v9  ;;  %v407_v9 = vmax.f32 %v359_v63, 0.0  ;;  %v3875_v63 = vld [vmem:[%s5465_s3 + $0x90] ss:$12 sps:$4 sm:$0xff]  }
  0x31   : > { %921 = vmatpush2.bf16.msra.mxu0 %v3827_v48  ;;  %3404 = vmatprep.subr.bf16.mxu1 %v3865_v17  ;;  %v378_v48 = vld [vmem:[%s4192_s12 + $0x130] sm:$0xff]  ;;  %v435_v17 = vmax.f32 %v387_v8, 0.0 }
  0x32   : > { %922 = vmatprep.subr.bf16.mxu0 %v3830_v50  ;;  %v397_v50 = vmax.f32 %v349_v41, 0.0  ;;  %v379_v41 = vld [vmem:[%s4192_s12 + $0x138] sm:$0xff]  ;;  %v3883_v8 = vld [vmem:[%s5465_s3 + $0x64] ss:$12 sps:$4 sm:$0xff]  }
  0x34   : > { %3405 = vmatpush3.bf16.msra.mxu1 %v3866_v18  ;;  %v4383_v60 = vpack.c.bf16 %v397_v50, %v394_v49  ;;  %v383_v49 = vld [vmem:[%s4192_s12 + $0x158] sm:$0xff]  ;;  %v386_v50 = vld [vmem:[%s4192_s12 + $0x170] sm:$0xff] }
  0x35   : > { %923 = vmatpush2.bf16.msra.mxu0 %v3833_v53  ;;  %3406 = vmatprep.subr.bf16.mxu1 %v3867_v28  ;;  %v401_v53 = vmax.f32 %v353_v42, 0.0  ;;  %v373_v28 = vld [vmem:[%s4192_s12 + $0x108] sm:$0xff] }
  0x36   : > { %924 = vmatprep.subr.bf16.mxu0 %v3836_v56  ;;  %v352_v56 = vld [vmem:[%s4192_s12 + $0x60] sm:$0xff] }
  0x37   : > { %3273 = vmatmul.mubr.msk.bf16.gmra.mxu1 %vm877_vm0, %v4301_v7  ;;  %v4387_v62 = vpack.c.bf16 %v404_v54, %v401_v53  ;;  %v400_v5 = vmax.f32 %v352_v56, 0.0  ;;  %v3872_v53 = vld [vmem:[%s5465_s3 + $0xa8] ss:$12 sps:$4 sm:$0xff]  }
  0x38   : > { %1087 = vmatprep.mubr.bf16.mxu1 %v4072_v2  ;;  %3407 = vmatpush3.bf16.msra.mxu1 %v3868_v33  ;;  %v382_v54 = vld [vmem:[%s4192_s12 + $0x150] sm:$0xff] }
  0x39   : > { %925 = vmatpush2.bf16.msra.mxu0 %v3839_v57  ;;  %3408 = vmatprep.subr.bf16.mxu1 %v3869_v34  ;;  %v426_v57 = vmax.f32 %v378_v48, 0.0  ;;  %v377_v34 = vld [vmem:[%s4192_s12 + $0x128] sm:$0xff] }
  0x3a   : > { %926 = vmatprep.subr.bf16.mxu0 %v3840_v61  ;;  %v355_v61 = vld [vmem:[%s4192_s12 + $0x78] sm:$0xff]  ;;  %v425_v51 = vmax.f32 %v377_v34, 0.0 }
  0x3b   : > { %v403_v6 = vmax.f32 %v355_v61, 0.0  ;;  %v434_v61 = vmax.f32 %v386_v50, 0.0  ;;  %v3920_v34 = vld [vmem:[%s5465_s3 + $0x170] ss:$12 sps:$4 sm:$0xff]   ;;  %v3949_v50 = vld [vmem:[%s5465_s3 + $0x198] ss:$12 sps:$4 sm:$0xff]  }
  0x3c   : > { %3409 = vmatpush3.bf16.msra.mxu1 %v3870_v39  ;;  %v376_v39 = vld [vmem:[%s4192_s12 + $0x120] sm:$0xff] }
  0x3d   : > { %927 = vmatpush2.bf16.msra.mxu0 %v3842_v3  ;;  %1891 = vmatprep.subr.bf16.mxu1 %v3874_v52  ;;  %v4394_v3 = vpack.c.bf16 %v429_v59, %v426_v57  ;;  %v4407_v18 = vpack.c.bf16 %v403_v6, %v400_v5  ;;  %v428_v52 = vmax.f32 %v380_v35, 0.0  ;;  %v424_v56 = vmax.f32 %v376_v39, 0.0  ;;  %v3925_v35 = vld [vmem:[%s5465_s3 + $0x210] ss:$12 sps:$4 sm:$0xff]  }
  0x3e   : > { %928 = vmatprep.subr.bf16.mxu0 %v3843_v4  ;;  %v384_v4 = vld [vmem:[%s4192_s12 + $0x160] sm:$0xff]  ;;  %v427_v57 = vmax.f32 %v379_v41, 0.0  ;;  %v431_v59 = vmax.f32 %v383_v49, 0.0  ;;  %v3951_v49 = vld [vmem:[%s5465_s3 + $0x19c] ss:$12 sps:$4 sm:$0xff]  }
  0x3f   : > { %3274 = vmatmul.mubr.msk.bf16.gmra.mxu1 %vm877_vm0, %v4335_v26  ;;  %v432_v16 = vmax.f32 %v384_v4, 0.0  ;;  %v430_v4 = vmax.f32 %v382_v54, 0.0  ;;  %v3936_v39 = vld [vmem:[%s5465_s3 + $0x1e4] ss:$12 sps:$4 sm:$0xff]   ;;  %v3934_v41 = vld [vmem:[%s5465_s3 + $0x1e0] ss:$12 sps:$4 sm:$0xff]  }
  0x40   : > { %1097 = vmatprep.mubr.bf16.mxu1 %v4072_v2  ;;  %v458_v14 = vpack.c.bf16 %v434_v61, %v431_v59 }
  0x41   : > { %929 = vmatpush2.bf16.msra.mxu0 %v3845_v10  ;;  %v410_v10 = vmax.f32 %v362_v0, 0.0  ;;  %v4415_v25 = vpack.c.bf16 %v435_v17, %v432_v16  ;;  %v3880_v0 = vld [vmem:[%s5465_s3 + $0x7c] ss:$12 sps:$4 sm:$0xff]   ;;  %v3890_v16 = vld [vmem:[%s5465_s3 + $0x18] ss:$12 sps:$4 sm:$0xff]  }
  0x42   : > { %930 = vmatprep.subr.bf16.mxu0 %v3846_v11  ;;  %v358_v11 = vld [vmem:[%s4192_s12 + $0x90] sm:$0xff] }
  0x43   : > { %v4411_v20 = vpack.c.bf16 %v410_v10, %v407_v9  ;;  %v406_v22 = vmax.f32 %v358_v11, 0.0  ;;  %v3886_v9 = vld [vmem:[%s5465_s3 + $0x4c] ss:$12 sps:$4 sm:$0xff]   ;;  %v455_v11 = vpack.c.bf16 %v428_v52, %v425_v51  ;;  %v3895_v17 = vld [vmem:[%s5465_s3 + $0x4] ss:$12 sps:$4 sm:$0xff]  }
  0x44   : > { %v3956_v51 = vld [vmem:[%s5465_s3 + $0x184] ss:$12 sps:$4 sm:$0xff]   ;;  %v3954_v52 = vld [vmem:[%s5465_s3 + $0x180] ss:$12 sps:$4 sm:$0xff]  }
  0x45   : > { %931 = vmatpush2.bf16.msra.mxu0 %v3848_v19  ;;  %v367_v19 = vld [vmem:[%s4192_s12 + $0xd8] sm:$0xff]  ;;  %v4427_v42 = vpack.c.bf16 %v409_v23, %v406_v22  ;;  %v3901_v22 = vld [vmem:[%s5465_s3 + $0x154] ss:$12 sps:$4 sm:$0xff]  }
  0x46   : > { %932 = vmatprep.subr.bf16.mxu0 %v3849_v21  ;;  %v371_v21 = vld [vmem:[%s4192_s12 + $0xf8] sm:$0xff]  ;;  %v415_v33 = vmax.f32 %v367_v19, 0.0 }
  0x47   : > { %3275 = vmatmul.mubr.msk.bf16.gmra.mxu1 %vm877_vm0, %v4368_v47  ;;  %v419_v36 = vmax.f32 %v371_v21, 0.0  ;;  %v3898_v19 = vld [vmem:[%s5465_s3 + $0x16c] ss:$12 sps:$4 sm:$0xff]   ;;  %v3896_v21 = vld [vmem:[%s5465_s3 + $0x168] ss:$12 sps:$4 sm:$0xff]  }
  0x48   : > { %1107 = vmatprep.mubr.bf16.mxu1 %v4072_v2  ;;  %v3899_v23 = vld [vmem:[%s5465_s3 + $0x150] ss:$12 sps:$4 sm:$0xff]  }
  0x49   : > { %933 = vmatpush2.bf16.msra.mxu0 %v3852_v24  ;;  %v374_v24 = vld [vmem:[%s4192_s12 + $0x110] sm:$0xff] }
  0x4a   : > { %3646 = vmatprep.subr.bf16.mxu0 %v3854_v30  ;;  %v422_v38 = vmax.f32 %v374_v24, 0.0  ;;  %v3904_v24 = vld [vmem:[%s5465_s3 + $0x13c] ss:$12 sps:$4 sm:$0xff]  }
  0x4c   : > { %935 = vmatmul.mubr.bf16.vlgmr.msra.gmra.mxu0 %v4353_v37  ;;  %v452_v5 = vpack.c.bf16 %v422_v38, %v419_v36  ;;  %v3932_v36 = vld [vmem:[%s5465_s3 + $0x1fc] ss:$12 sps:$4 sm:$0xff]   ;;  %v3930_v38 = vld [vmem:[%s5465_s3 + $0x1f8] ss:$12 sps:$4 sm:$0xff]  }
  0x4d   : > { %3647 = vmatpush3.bf16.msra.mxu0 %v3854_v30  ;;  %944 = vmatprep.mubr.bf16.mxu0 %v4360_v40  ;;  %v413_v30 = vmax.f32 %v365_v13, 0.0  ;;  %v454_v13 = vpack.c.bf16 %v427_v57, %v424_v56 }
  0x4e   : > { %3648 = vmatprep.subr.bf16.mxu0 %v3859_v46 }
  0x4f   : > { %3276 = vmatmul.mubr.msk.bf16.gmra.mxu1 %vm877_vm0, %v4394_v3  ;;  %v4430_v48 = vpack.c.bf16 %v416_v31, %v413_v30  ;;  %v3913_v30 = vld [vmem:[%s5465_s3 + $0xf4] ss:$12 sps:$4 sm:$0xff]   ;;  %v3916_v31 = vld [vmem:[%s5465_s3 + $0xdc] ss:$12 sps:$4 sm:$0xff]  }
  0x50   : > { %1117 = vmatprep.mubr.bf16.mxu1 %v4072_v2 }
  0x51   : > { %3649 = vmatpush3.bf16.msra.mxu0 %v3859_v46  ;;  %v421_v46 = vmax.f32 %v373_v28, 0.0  ;;  %v3910_v28 = vld [vmem:[%s5465_s3 + $0x10c] ss:$12 sps:$4 sm:$0xff]  }
  0x52   : > { %3650 = vmatprep.subr.bf16.mxu0 %v3864_v55 }
  0x53   : > { %v451_v10 = vpack.c.bf16 %v421_v46, %v418_v43  ;;  %v3939_v43 = vld [vmem:[%s5465_s3 + $0x1c8] ss:$12 sps:$4 sm:$0xff]  }
  0x54   : > { %945 = vmatmul.mubr.bf16.gmra.mxu0 %v4383_v60  ;;  %v3946_v46 = vld [vmem:[%s5465_s3 + $0x1b4] ss:$12 sps:$4 sm:$0xff]  }
  0x55   : > { %954 = vmatprep.mubr.bf16.mxu0 %v4387_v62  ;;  %3651 = vmatpush3.bf16.msra.mxu0 %v3864_v55  ;;  %v3877_v55 = vld [vmem:[%s5465_s3 + $0x94] ss:$12 sps:$4 sm:$0xff]  }
  0x56   : > { %3652 = vmatprep.subr.bf16.mxu0 %v3871_v1 }
  0x57   : > { %3277 = vmatmul.mubr.msk.bf16.gmra.mxu1 %vm877_vm0, %v4415_v25 }
  0x58   : > { %1160 = vmatprep.mubr.bf16.mxu1 %v4241_v45  ;;  %v385_v45 = vld [vmem:[%s4192_s12 + $0x168] sm:$0xff]  ;;  %s5409_s12 = scalar_lea.vmem %s5471_s9, %s3209_s14 }
  0x59   : > { %3653 = vmatpush3.bf16.msra.mxu0 %v3871_v1  ;;  %v448_v1 = vpack.c.bf16 %v415_v33, %v412_v32  ;;  %v433_v6 = vmax.f32 %v385_v45, 0.0  ;;  %v3919_v32 = vld [vmem:[%s5465_s3 + $0xc4] ss:$12 sps:$4 sm:$0xff]   ;;  %v3917_v33 = vld [vmem:[%s5465_s3 + $0xc0] ss:$12 sps:$4 sm:$0xff]  }
  0x5c   : > { %955 = vmatmul.mubr.bf16.gmra.mxu0 %v4407_v18 }
  0x5d   : > { %964 = vmatprep.mubr.bf16.mxu0 %v4411_v20 }
  0x5f   : > { %1161 = vmatmul.mubr.bf16.vlgmr.msra.gmra.mxu1 %v4353_v37  ;;  %v3878_v37 = vld [vmem:[%s5465_s3 + $0x78] ss:$12 sps:$4 sm:$0xff]  }
  0x60   : > { %1168 = vmatprep.mubr.bf16.mxu1 %v4360_v40  ;;  %1892 = vmatpush1.bf16.msra.mxu1 %v3872_v53  ;;  %v3881_v40 = vld [vmem:[%s5465_s3 + $0x60] ss:$12 sps:$4 sm:$0xff]   ;;  %v4610_v53 = vld [vmem:[%s5465_s3 + $0x230] ss:$12 sps:$4 sm:$0xff]  }
  0x61   : > { %1893 = vmatprep.subr.bf16.mxu1 %v3877_v55 }
  0x64   : > { %965 = vmatmul.mubr.bf16.gmra.mxu0 %v4427_v42  ;;  %1894 = vmatpush1.bf16.msra.mxu1 %v3875_v63 }
  0x65   : > { %974 = vmatprep.mubr.bf16.mxu0 %v4430_v48  ;;  %1895 = vmatprep.subr.bf16.mxu1 %v3880_v0 }
  0x67   : > { %1169 = vmatmul.mubr.bf16.gmra.mxu1 %v4383_v60  ;;  %v3889_v60 = vld [vmem:[%s5465_s3 + $0x34] ss:$12 sps:$4 sm:$0xff]  }
  0x68   : > { %1176 = vmatprep.mubr.bf16.mxu1 %v4387_v62  ;;  %1896 = vmatpush1.bf16.msra.mxu1 %v3878_v37  ;;  %v3887_v62 = vld [vmem:[%s5465_s3 + $0x30] ss:$12 sps:$4 sm:$0xff]   ;;  %v542_v37 = vlaneseq }
  0x69   : > { %1897 = vmatprep.subr.bf16.mxu1 %v3883_v8 }
  0x6c   : > { %975 = vmatmul.mubr.bf16.gmra.mxu0 %v448_v1  ;;  %1898 = vmatpush1.bf16.msra.mxu1 %v3881_v40 }
  0x6d   : > { %984 = vmatprep.mubr.bf16.mxu0 %v452_v5  ;;  %1899 = vmatprep.subr.bf16.mxu1 %v3886_v9  ;;  %v4627_v9 = vshrl.u32 %v542_v37, 7 }
  0x6f   : > { %1177 = vmatmul.mubr.bf16.gmra.mxu1 %v4407_v18  ;;  %v3893_v18 = vld [vmem:[%s5465_s3] ss:$12 sps:$4 sm:$0xff]  }
  0x70   : > { %1184 = vmatprep.mubr.bf16.mxu1 %v4411_v20  ;;  %1900 = vmatpush1.bf16.msra.mxu1 %v3884_v12  ;;  %v457_v20 = vpack.c.bf16 %v433_v6, %v430_v4 }
  0x71   : > { %1901 = vmatprep.subr.bf16.mxu1 %v3889_v60  ;;  %v544_v60 = vsub.s32 0, %v4627_v9 }
  0x74   : > { %985 = vmatmul.mubr.bf16.gmra.mxu0 %v451_v10  ;;  %1902 = vmatpush1.bf16.msra.mxu1 %v3887_v62  ;;  %v4638_v62 = vld [vmem:[%s5464_s2] sm:$0x7] }
  0x75   : > { %994 = vmatprep.mubr.bf16.mxu0 %v455_v11  ;;  %1903 = vmatprep.subr.bf16.mxu1 %v3892_v15 }
  0x77   : > { %1185 = vmatmul.mubr.bf16.gmra.mxu1 %v4427_v42  ;;  %v3941_v42 = vld [vmem:[%s5465_s3 + $0x1cc] ss:$12 sps:$4 sm:$0xff]  }
  0x78   : > { %1192 = vmatprep.mubr.bf16.mxu1 %v4430_v48  ;;  %1904 = vmatpush1.bf16.msra.mxu1 %v3890_v16  ;;  %v3944_v48 = vld [vmem:[%s5465_s3 + $0x1b0] ss:$12 sps:$4 sm:$0xff]   ;;  %v4652_v16 = vrot.slane %v4638_v62, %v544_v60 }
  0x79   : > { %1905 = vmatprep.subr.bf16.mxu1 %v3895_v17 }
  0x7c   : > { %995 = vmatmul.mubr.bf16.gmra.mxu0 %v454_v13  ;;  %1906 = vmatpush1.bf16.msra.mxu1 %v3893_v18 }
  0x7d   : > { %1004 = vmatprep.mubr.bf16.mxu0 %v458_v14  ;;  %1907 = vmatprep.subr.bf16.mxu1 %v3898_v19 }
  0x7f   : > { %1193 = vmatmul.mubr.bf16.gmra.mxu1 %v448_v1 }
  0x80   : > { %1200 = vmatprep.mubr.bf16.mxu1 %v452_v5  ;;  %1908 = vmatpush2.bf16.msra.mxu1 %v3896_v21 }
  0x81   : > { %1909 = vmatprep.subr.bf16.mxu1 %v3901_v22 }
  0x84   : > { %1005 = vmatmul.mubr.bf16.gmra.mxu0 %v457_v20  ;;  %1910 = vmatpush2.bf16.msra.mxu1 %v3899_v23 }
  0x85   : > { %3654 = vmatprep.mubr.msk.bf16.mxu0 %vm877_vm0, %v4212_v29  ;;  %v3902_v29 = vld [vmem:[%s5465_s3 + $0x138] ss:$12 sps:$4 sm:$0xff]   ;;  %1911 = vmatprep.subr.bf16.mxu1 %v3904_v24 }
  0x87   : > { %1201 = vmatmul.mubr.bf16.gmra.mxu1 %v451_v10 }
  0x88   : > { %1208 = vmatprep.mubr.bf16.mxu1 %v455_v11  ;;  %1912 = vmatpush2.bf16.msra.mxu1 %v3902_v29  ;;  %v548_v11 = vsub.s32 1, %v4627_v9 }
  0x89   : > { %1913 = vmatprep.subr.bf16.mxu1 %v3907_v27 }
  0x8c   : > { %3655 = vmatmul.mubr.msk.bf16.vlgmr.msra.gmra.mxu0 %vm877_vm0, %v4239_v44  ;;  %v3905_v44 = vld [vmem:[%s5465_s3 + $0x120] ss:$12 sps:$4 sm:$0xff]  }
  0x8d   : > { %3658 = vmatprep.mubr.msk.bf16.mxu0 %vm877_vm0, %v4275_v58  ;;  %1914 = vmatpush2.bf16.msra.mxu1 %v3905_v44  ;;  %v3908_v58 = vld [vmem:[%s5465_s3 + $0x108] ss:$12 sps:$4 sm:$0xff]  }
  0x8e   : > { %1915 = vmatprep.subr.bf16.mxu1 %v3910_v28 }
  0x8f   : > { %1209 = vmatmul.mubr.bf16.gmra.mxu1 %v454_v13 }
  0x90   : > { %1216 = vmatprep.mubr.bf16.mxu1 %v458_v14  ;;  %v4645_v14 = vrot.slane %v4638_v62, %v548_v11 }
  0x91   : > { %1916 = vmatpush2.bf16.msra.mxu1 %v3908_v58 }
  0x92   : > { %1917 = vmatprep.subr.bf16.mxu1 %v3913_v30 }
  0x94   : > { %3659 = vmatmul.mubr.msk.bf16.gmra.mxu0 %vm877_vm0, %v4301_v7  ;;  %v3911_v7 = vld [vmem:[%s5465_s3 + $0xf0] ss:$12 sps:$4 sm:$0xff]  }
  0x95   : > { %3662 = vmatprep.mubr.msk.bf16.mxu0 %vm877_vm0, %v4335_v26  ;;  %1918 = vmatpush2.bf16.msra.mxu1 %v3911_v7  ;;  %v3914_v26 = vld [vmem:[%s5465_s3 + $0xd8] ss:$12 sps:$4 sm:$0xff]  }
  0x96   : > { %1919 = vmatprep.subr.bf16.mxu1 %v3916_v31 }
  0x97   : > { %1217 = vmatmul.mubr.bf16.gmra.mxu1 %v457_v20 }
  0x99   : > { %1920 = vmatpush2.bf16.msra.mxu1 %v3914_v26 }
  0x9a   : > { %1921 = vmatprep.subr.bf16.mxu1 %v3919_v32 }
  0x9c   : > { %3663 = vmatmul.mubr.msk.bf16.gmra.mxu0 %vm877_vm0, %v4368_v47  ;;  %v3924_v47 = vld [vmem:[%s5465_s3 + $0x22c] ss:$12 sps:$4 sm:$0xff]  }
  0x9d   : > { %3666 = vmatprep.mubr.msk.bf16.mxu0 %vm877_vm0, %v4394_v3  ;;  %1922 = vmatpush2.bf16.msra.mxu1 %v3917_v33  ;;  %v3922_v3 = vld [vmem:[%s5465_s3 + $0x228] ss:$12 sps:$4 sm:$0xff]  }
  0x9e   : > { %2004 = vmatprep.subr.bf16.mxu0 %v3924_v47  ;;  %3470 = vmatprep.subr.bf16.mxu1 %v3920_v34 }
  0x9f   : > { %2005 = vmatpush1.bf16.msra.mxu0 %v3922_v3 }
  0xa4   : > { %3667 = vmatmul.mubr.msk.bf16.gmra.mxu0 %vm877_vm0, %v4415_v25  ;;  %v3927_v25 = vld [vmem:[%s5465_s3 + $0x214] ss:$12 sps:$4 sm:$0xff]  }
  0xa5   : > { %2036 = vmatprep.mubr.bf16.mxu0 %v4072_v2  ;;  %2006 = vmatprep.subr.bf16.mxu0 %v3927_v25 }
  0xa6   : > { %2007 = vmatpush1.bf16.msra.mxu0 %v3925_v35 }
  0xa7   : > { %2008 = vmatprep.subr.bf16.mxu0 %v3932_v36 }
  0xaa   : > { %2009 = vmatpush1.bf16.msra.mxu0 %v3930_v38 }
  0xab   : > { %2010 = vmatprep.subr.bf16.mxu0 %v3936_v39 }
  0xae   : > { %2011 = vmatpush1.bf16.msra.mxu0 %v3934_v41 }
  0xaf   : > { %2012 = vmatprep.subr.bf16.mxu0 %v3941_v42 }
  0xb2   : > { %2013 = vmatpush1.bf16.msra.mxu0 %v3939_v43 }
  0xb3   : > { %2014 = vmatprep.subr.bf16.mxu0 %v3946_v46  ;;  %v3921_v46 = vld [vmem:[%s5465_s3 + $0xb0] ss:$12 sps:$4 sm:$0xff]  }
  0xb6   : > { %2015 = vmatpush1.bf16.msra.mxu0 %v3944_v48 }
  0xb7   : > { %2016 = vmatprep.subr.bf16.mxu0 %v3951_v49 }
  0xba   : > { %2017 = vmatpush1.bf16.msra.mxu0 %v3949_v50  ;;  %v3928_v50 = vld [vmem:[%s5465_s3 + $0x158] ss:$12 sps:$4 sm:$0xff]  }
  0xbb   : > { %2018 = vmatprep.subr.bf16.mxu0 %v3956_v51 }
  0xbe   : > { %2019 = vmatpush1.bf16.msra.mxu0 %v3954_v52 }
  0xbf   : > { %3670 = vmatprep.subr.bf16.mxu0 %v4610_v53 }
  0xdf   : > { %v1049_v54 = vpop.f32.mrf.mxu1 }
  0xe1   : > { %v1051_v55 = vpop.f32.mrf.mxu1 }
  0xe3   : > { %v1053_v56 = vpop.f32.mrf.mxu1 }
  0xe5   : > { %v1055_v57 = vpop.f32.mrf.mxu1 }
  0xe7   : > { %v1059_v45 = vpop.f32.mrf.mxu1 }
  0xe9   : > { %v1061_v59 = vpop.f32.mrf.mxu1 }
  0xeb   : > { %v1063_v61 = vpop.f32.mrf.mxu1 }
  0xed   : > { %v1065_v63 = vpop.f32.mrf.mxu1 }
  0xef   : > { %v4613_v0 = vpop.f32.mrf.mxu1 }
  0xf1   : > { %v4615_v1 = vpop.f32.mrf.mxu1 }
  0xf3   : > { %v4617_v4 = vpop.f32.mrf.mxu1 }
  0xf5   : > { %v4619_v5 = vpop.f32.mrf.mxu1 }
  0xf7   : > { %v4621_v6 = vpop.f32.mrf.mxu1 }
  0xf9   : > { %v4623_v8 = vpop.f32.mrf.mxu1 }
  0xfb   : > { %v4625_v40 = vpop.f32.mrf.mxu1 }
  0xfd   : > { %v4629_v10 = vpop.f32.mrf.mxu1 }
  0xff   : > { %v4632_v12 = vpop.f32.mrf.mxu1 }
 0x101   : > { %v4640_v13 = vpop.f32.mrf.mxu1 }
 0x103   : > { %v4647_v15 = vpop.f32.mrf.mxu1 }
 0x105   : > { %v4654_v18 = vpop.f32.mrf.mxu1 }
 0x107   : > { %v4657_v21 = vpop.f32.mrf.mxu1 }
 0x109   : > { %v4661_v29 = vpop.f32.mrf.mxu1 }
 0x10b   : > { %v4664_v30 = vpop.f32.mrf.mxu1 }
 0x10c   : > { %v936_v17 = vpop.f32.mrf.mxu0 }
 0x10d   : > { %v937_v22 = vadd.f32 %v936_v17, %v4652_v16  ;;  %v4666_v32 = vpop.f32.mrf.mxu1 }
 0x10e   : > { %v938_v19 = vpop.f32.mrf.mxu0 }
 0x10f   : > { %v939_v20 = vadd.f32 %v938_v19, %v4645_v14  ;;  %v1050_v7 = vadd.f32 %v1049_v54, %v937_v22  ;;  %v4669_v35 = vpop.f32.mrf.mxu1  ;;  %v3929_v19 = vld [vmem:[%s5465_s3 + $0x98] ss:$12 sps:$4 sm:$0xff]  }
 0x110   : > { %v940_v23 = vpop.f32.mrf.mxu0 }
 0x111   : > { %v941_v24 = vadd.f32 %v940_v23, %v4652_v16  ;;  %v1052_v44 = vadd.f32 %v1051_v55, %v939_v20  ;;  %v1322_v36 = vmax.f32 %v1050_v7, 0.0  ;;  %v4675_v43 = vpop.f32.mrf.mxu1  ;;  %v3933_v20 = vld [vmem:[%s5465_s3 + $0x140] ss:$12 sps:$4 sm:$0xff]  }
 0x112   : > { %v942_v27 = vpop.f32.mrf.mxu0 }
 0x113   : > { %v1054_v28 = vadd.f32 %v1053_v56, %v941_v24  ;;  %v943_v58 = vadd.f32 %v942_v27, %v4645_v14  ;;  %v1323_v3 = vmax.f32 %v1052_v44, 0.0  ;;  %v4687_v55 = vpop.f32.mrf.mxu1 }
 0x114   : > { %v946_v31 = vpop.f32.mrf.mxu0 }
 0x115   : > { %v1056_v26 = vadd.f32 %v1055_v57, %v943_v58  ;;  %v1325_v33 = vmax.f32 %v1054_v28, 0.0  ;;  %v947_v38 = vadd.f32 %v946_v31, %v4652_v16  ;;  %v4690_v17 = vpop.f32.mrf.mxu1  ;;  %v3937_v31 = vld [vmem:[%s5465_s3 + $0x80] ss:$12 sps:$4 sm:$0xff]  }
 0x116   : > { %v948_v47 = vpop.f32.mrf.mxu0 }
 0x117   : > { %v1326_v34 = vmax.f32 %v1056_v26, 0.0  ;;  %v949_v25 = vadd.f32 %v948_v47, %v4645_v14  ;;  %v4680_v48 = vpack.c.bf16 %v1325_v33, %v1322_v36  ;;  %v1060_v56 = vadd.f32 %v1059_v45, %v947_v38  ;;  %v4699_v24 = vpop.f32.mrf.mxu1  ;;  %v3938_v47 = vld [vmem:[%s5465_s3 + $0x128] ss:$12 sps:$4 sm:$0xff]  }
 0x118   : > { %v950_v39 = vpop.f32.mrf.mxu0 }
 0x119   : > { %v951_v41 = vadd.f32 %v950_v39, %v4652_v16  ;;  %v4673_v42 = vpack.c.bf16 %v1326_v34, %v1323_v3  ;;  %v1062_v51 = vadd.f32 %v1061_v59, %v949_v25  ;;  %v4705_v7 = vpop.f32.mrf.mxu1 }
 0x11a   : > { %v952_v49 = vpop.f32.mrf.mxu0 }
 0x11b   : > { %v1064_v52 = vadd.f32 %v1063_v61, %v951_v41  ;;  %v953_v54 = vadd.f32 %v952_v49, %v4645_v14  ;;  %1923 = vmatprep.mubr.bf16.mxu1 %v4673_v42  ;;  %v1329_v22 = vmax.f32 %v1062_v51, 0.0  ;;  %v4719_v36 = vpop.f32.mrf.mxu1 }
 0x11c   : > { %v956_v57 = vpop.f32.mrf.mxu0  ;;  %1924 = vmatmul.mubr.bf16.vlgmr.msra.gmra.mxu1 %v4680_v48 }
 0x11d   : > { %v1066_v37 = vadd.f32 %v1065_v63, %v953_v54  ;;  %3471 = vmatpush3.bf16.msra.mxu1 %v3921_v46  ;;  %v1331_v59 = vmax.f32 %v1064_v52, 0.0  ;;  %v1328_v63 = vmax.f32 %v1060_v56, 0.0  ;;  %v957_v27 = vadd.f32 %v956_v57, %v4652_v16  ;;  %v4724_v46 = vpop.f32.mrf.mxu1 }
 0x11e   : > { %v958_v61 = vpop.f32.mrf.mxu0  ;;  %3472 = vmatprep.subr.bf16.mxu1 %v3928_v50  ;;  %v3943_v50 = vld [vmem:[%s5465_s3 + $0x110] ss:$12 sps:$4 sm:$0xff]  }
 0x11f   : > { %v1332_v45 = vmax.f32 %v1066_v37, 0.0  ;;  %v959_v23 = vadd.f32 %v958_v61, %v4645_v14  ;;  %v4710_v33 = vpack.c.bf16 %v1331_v59, %v1328_v63  ;;  %v1070_v38 = vadd.f32 %v4613_v0, %v957_v27  ;;  %v4733_v54 = vpop.f32.mrf.mxu1  ;;  %v3947_v61 = vld [vmem:[%s5465_s3 + $0x50] ss:$12 sps:$4 sm:$0xff]  }
 0x120   : > { %v960_v44 = vpop.f32.mrf.mxu0 }
 0x121   : > { %v961_v28 = vadd.f32 %v960_v44, %v4652_v16  ;;  %v4703_v58 = vpack.c.bf16 %v1332_v45, %v1329_v22  ;;  %3473 = vmatpush3.bf16.msra.mxu1 %v3929_v19  ;;  %v1072_v3 = vadd.f32 %v4615_v1, %v959_v23  ;;  %v3942_v1 = vld [vmem:[%s5465_s3 + $0x68] ss:$12 sps:$4 sm:$0xff]   ;;  %v4739_v59 = vpop.f32.mrf.mxu1  ;;  %v3948_v45 = vld [vmem:[%s5465_s3 + $0xf8] ss:$12 sps:$4 sm:$0xff]  }
 0x122   : > { %v962_v26 = vpop.f32.mrf.mxu0  ;;  %3474 = vmatprep.subr.bf16.mxu1 %v3933_v20 }
 0x123   : > { %v1074_v34 = vadd.f32 %v4617_v4, %v961_v28  ;;  %v963_v25 = vadd.f32 %v962_v26, %v4645_v14  ;;  %1933 = vmatprep.mubr.bf16.mxu1 %v4703_v58  ;;  %v1335_v0 = vmax.f32 %v1072_v3, 0.0  ;;  %v4753_v44 = vpop.f32.mrf.mxu1 }
 0x124   : > { %v966_v39 = vpop.f32.mrf.mxu0  ;;  %1934 = vmatmul.mubr.bf16.gmra.mxu1 %v4710_v33 }
 0x125   : > { %v1076_v41 = vadd.f32 %v4619_v5, %v963_v25  ;;  %3475 = vmatpush3.bf16.msra.mxu1 %v3937_v31  ;;  %v1337_v4 = vmax.f32 %v1074_v34, 0.0  ;;  %v1334_v5 = vmax.f32 %v1070_v38, 0.0  ;;  %v967_v56 = vadd.f32 %v966_v39, %v4652_v16  ;;  %v3953_v34 = vld [vmem:[%s5465_s3 + $0xe0] ss:$12 sps:$4 sm:$0xff]  }
 0x126   : > { %v968_v49 = vpop.f32.mrf.mxu0  ;;  %3476 = vmatprep.subr.bf16.mxu1 %v3938_v47  ;;  %v4758_v47 = vpop.f32.mrf.mxu1 }
 0x127   : > { %v1338_v51 = vmax.f32 %v1076_v41, 0.0  ;;  %v969_v52 = vadd.f32 %v968_v49, %v4645_v14  ;;  %v4744_v22 = vpack.c.bf16 %v1337_v4, %v1334_v5  ;;  %v1080_v28 = vadd.f32 %v4621_v6, %v967_v56  ;;  %v3958_v5 = vld [vmem:[%s5465_s3 + $0xc8] ss:$12 sps:$4 sm:$0xff]  }
 0x128   : > { %v970_v57 = vpop.f32.mrf.mxu0  ;;  %v4767_v39 = vpop.f32.mrf.mxu1 }
 0x129   : > { %v971_v37 = vadd.f32 %v970_v57, %v4652_v16  ;;  %v4737_v19 = vpack.c.bf16 %v1338_v51, %v1335_v0  ;;  %3477 = vmatpush3.bf16.msra.mxu1 %v3942_v1  ;;  %v1082_v23 = vadd.f32 %v4623_v8, %v969_v52  ;;  %v3952_v8 = vld [vmem:[%s5465_s3 + $0x38] ss:$12 sps:$4 sm:$0xff]   ;;  %v3957_v0 = vld [vmem:[%s5465_s3 + $0x20] ss:$12 sps:$4 sm:$0xff]  }
 0x12a   : > { %v972_v20 = vpop.f32.mrf.mxu0  ;;  %3478 = vmatprep.subr.bf16.mxu1 %v3943_v50  ;;  %v4773_v50 = vpop.f32.mrf.mxu1 }
 0x12b   : > { %v1084_v63 = vadd.f32 %v4625_v40, %v971_v37  ;;  %v973_v27 = vadd.f32 %v972_v20, %v4645_v14  ;;  %1943 = vmatprep.mubr.bf16.mxu1 %v4737_v19  ;;  %v1341_v6 = vmax.f32 %v1082_v23, 0.0 }
 0x12c   : > { %v976_v31 = vpop.f32.mrf.mxu0  ;;  %1944 = vmatmul.mubr.bf16.gmra.mxu1 %v4744_v22 }
 0x12d   : > { %v1086_v26 = vadd.f32 %v4629_v10, %v973_v27  ;;  %3479 = vmatpush3.bf16.msra.mxu1 %v3947_v61  ;;  %v1343_v40 = vmax.f32 %v1084_v63, 0.0  ;;  %v1340_v10 = vmax.f32 %v1080_v28, 0.0  ;;  %v977_v41 = vadd.f32 %v976_v31, %v4652_v16  ;;  %v4787_v61 = vpop.f32.mrf.mxu1 }
 0x12e   : > { %v978_v3 = vpop.f32.mrf.mxu0  ;;  %3480 = vmatprep.subr.bf16.mxu1 %v3948_v45 }
 0x12f   : > { %v1344_v25 = vmax.f32 %v1086_v26, 0.0  ;;  %v979_v38 = vadd.f32 %v978_v3, %v4645_v14  ;;  %v4778_v52 = vpack.c.bf16 %v1343_v40, %v1340_v10  ;;  %v1090_v20 = vadd.f32 %v4632_v12, %v977_v41  ;;  %v4792_v63 = vpop.f32.mrf.mxu1 }
 0x130   : > { %v980_v1 = vpop.f32.mrf.mxu0 }
 0x131   : > { %v981_v4 = vadd.f32 %v980_v1, %v4652_v16  ;;  %v4771_v49 = vpack.c.bf16 %v1344_v25, %v1341_v6  ;;  %3481 = vmatpush3.bf16.msra.mxu1 %v3952_v8  ;;  %v1092_v56 = vadd.f32 %v4640_v13, %v979_v38  ;;  %v3959_v13 = vld [vmem:[%s5465_s3 + $0x8] ss:$12 sps:$4 sm:$0xff]   ;;  %v4798_v12 = vpop.f32.mrf.mxu1  ;;  %v1346_v8 = vmax.f32 %v1090_v20, 0.0 }
 0x132   : > { %v982_v51 = vpop.f32.mrf.mxu0  ;;  %3482 = vmatprep.subr.bf16.mxu1 %v3953_v34 }
 0x133   : > { %v1094_v57 = vadd.f32 %v4647_v15, %v981_v4  ;;  %v983_v37 = vadd.f32 %v982_v51, %v4645_v14  ;;  %1953 = vmatprep.mubr.bf16.mxu1 %v4771_v49  ;;  %v1347_v28 = vmax.f32 %v1092_v56, 0.0  ;;  %v4804_v6 = vpop.f32.mrf.mxu1 }
 0x134   : > { %v986_v45 = vpop.f32.mrf.mxu0  ;;  %1954 = vmatmul.mubr.bf16.gmra.mxu1 %v4778_v52 }
 0x135   : > { %v1096_v23 = vadd.f32 %v4654_v18, %v983_v37  ;;  %3483 = vmatpush3.bf16.msra.mxu1 %v3957_v0  ;;  %v1349_v15 = vmax.f32 %v1094_v57, 0.0  ;;  %v987_v40 = vadd.f32 %v986_v45, %v4652_v16  ;;  %v4812_v4 = vpop.f32.mrf.mxu1 }
 0x136   : > { %v988_v27 = vpop.f32.mrf.mxu0  ;;  %3484 = vmatprep.subr.bf16.mxu1 %v3958_v5 }
 0x137   : > { %v1350_v31 = vmax.f32 %v1096_v23, 0.0  ;;  %v989_v26 = vadd.f32 %v988_v27, %v4645_v14  ;;  %v4806_v38 = vpack.c.bf16 %v1349_v15, %v1346_v8  ;;  %v1100_v0 = vadd.f32 %v4657_v21, %v987_v40  ;;  %v4817_v56 = vpop.f32.mrf.mxu1 }
 0x138   : > { %v990_v18 = vpop.f32.mrf.mxu0 }
 0x139   : > { %v991_v3 = vadd.f32 %v990_v18, %v4652_v16  ;;  %v4802_v34 = vpack.c.bf16 %v1350_v31, %v1347_v28  ;;  %3485 = vmatpush3.bf16.msra.mxu1 %v3959_v13  ;;  %v1102_v10 = vadd.f32 %v4661_v29, %v989_v26  ;;  %v4820_v45 = vpop.f32.mrf.mxu1  ;;  %v1352_v23 = vmax.f32 %v1100_v0, 0.0 }
 0x13a   : > { %v992_v25 = vpop.f32.mrf.mxu0 }
 0x13b   : > { %v1104_v41 = vadd.f32 %v4664_v30, %v991_v3  ;;  %v993_v1 = vadd.f32 %v992_v25, %v4645_v14  ;;  %1963 = vmatprep.mubr.bf16.mxu1 %v4802_v34  ;;  %v1353_v29 = vmax.f32 %v1102_v10, 0.0  ;;  %v4826_v28 = vpop.f32.mrf.mxu1 }
 0x13c   : > { %v996_v51 = vpop.f32.mrf.mxu0  ;;  %1964 = vmatmul.mubr.bf16.gmra.mxu1 %v4806_v38 }
 0x13d   : > { %v1106_v5 = vadd.f32 %v4666_v32, %v993_v1  ;;  %v1355_v57 = vmax.f32 %v1104_v41, 0.0  ;;  %v997_v13 = vadd.f32 %v996_v51, %v4652_v16  ;;  %v4834_v18 = vpop.f32.mrf.mxu1 }
 0x13e   : > { %v998_v37 = vpop.f32.mrf.mxu0 }
 0x13f   : > { %v1356_v20 = vmax.f32 %v1106_v5, 0.0  ;;  %v999_v30 = vadd.f32 %v998_v37, %v4645_v14  ;;  %v4828_v31 = vpack.c.bf16 %v1355_v57, %v1352_v23  ;;  %v1110_v3 = vadd.f32 %v4669_v35, %v997_v13  ;;  %v4839_v41 = vpop.f32.mrf.mxu1 }
 0x140   : > { %v1000_v15 = vpop.f32.mrf.mxu0 }
 0x141   : > { %v1001_v21 = vadd.f32 %v1000_v15, %v4652_v16  ;;  %v4824_v27 = vpack.c.bf16 %v1356_v20, %v1353_v29  ;;  %v1112_v26 = vadd.f32 %v4675_v43, %v999_v30  ;;  %v552_v43 = vsub.s32 2, %v4627_v9  ;;  %v4843_v57 = vpop.f32.mrf.mxu1 }
 0x142   : > { %v1002_v32 = vpop.f32.mrf.mxu0  ;;  %v1358_v37 = vmax.f32 %v1110_v3, 0.0 }
 0x143   : > { %v1114_v8 = vadd.f32 %v4687_v55, %v1001_v21  ;;  %v1003_v40 = vadd.f32 %v1002_v32, %v4645_v14  ;;  %1973 = vmatprep.mubr.bf16.mxu1 %v4824_v27  ;;  %v1359_v55 = vmax.f32 %v1112_v26, 0.0  ;;  %v4854_v13 = vrot.slane %v4638_v62, %v552_v43 }
 0x144   : > { %v1006_v25 = vpop.f32.mrf.mxu0  ;;  %1974 = vmatmul.mubr.bf16.gmra.mxu1 %v4828_v31  ;;  %v3412_v21 = vadd.f32 %v4739_v59, %v4733_v54  ;;  %v3415_v62 = vadd.f32 %v4758_v47, %v4753_v44  ;;  %v3418_v44 = vadd.f32 %v4773_v50, %v4767_v39 }
 0x145   : > { %v1116_v10 = vadd.f32 %v4690_v17, %v1003_v40  ;;  %v1361_v1 = vmax.f32 %v1114_v8, 0.0  ;;  %v1007_v35 = vadd.f32 %v1006_v25, %v4652_v16  ;;  %v4849_v17 = vpop.f32.mrf.mxu1 }
 0x146   : > { %v1008_v0 = vpop.f32.mrf.mxu0  ;;  %v1171_v39 = vadd.f32 %v3418_v44, %v4854_v13 }
 0x147   : > { %v1362_v51 = vmax.f32 %v1116_v10, 0.0  ;;  %v1009_v5 = vadd.f32 %v1008_v0, %v4645_v14  ;;  %v4856_v15 = vpack.c.bf16 %v1361_v1, %v1358_v37  ;;  %v4864_v8 = vpop.f32.mrf.mxu1  ;;  %v1120_v40 = vadd.f32 %v4699_v24, %v1007_v35 }
 0x148   : > { %v1010_v29 = vpop.f32.mrf.mxu0  ;;  %v1163_v1 = vadd.f32 %v3412_v21, %v4854_v13  ;;  %v3424_v21 = vadd.f32 %v4804_v6, %v4798_v12 }
 0x149   : > { %v1011_v20 = vadd.f32 %v1010_v29, %v4652_v16  ;;  %v4847_v30 = vpack.c.bf16 %v1362_v51, %v1359_v55  ;;  %v1122_v32 = vadd.f32 %v4705_v7, %v1009_v5  ;;  %v4871_v59 = vpop.f32.mrf.mxu1  ;;  %v1364_v24 = vmax.f32 %v1120_v40, 0.0  ;;  %v3961_v40 = vld [vmem:[%s5465_s3 + $0x218] ss:$12 sps:$4 sm:$0xff]  }
 0x14a   : > { %v1012_v23 = vpop.f32.mrf.mxu0  ;;  %v1179_v12 = vadd.f32 %v3424_v21, %v4854_v13 }
 0x14b   : > { %v1124_v26 = vadd.f32 %v4719_v36, %v1011_v20  ;;  %v1013_v16 = vadd.f32 %v1012_v23, %v4645_v14  ;;  %1983 = vmatprep.mubr.bf16.mxu1 %v4847_v30  ;;  %v1365_v25 = vmax.f32 %v1122_v32, 0.0  ;;  %v3421_v14 = vadd.f32 %v4792_v63, %v4787_v61  ;;  %v4876_v55 = vpop.f32.mrf.mxu1 }
 0x14c   : > { %v3656_v3 = vpop.f32.mrf.mxu0  ;;  %1984 = vmatmul.mubr.bf16.gmra.mxu1 %v4856_v15 }
 0x14d   : > { %v1126_v54 = vadd.f32 %v4724_v46, %v1013_v16  ;;  %v1367_v7 = vmax.f32 %v1124_v26, 0.0  ;;  %v1166_v46 = vadd.f32 %v3415_v62, %v4854_v13  ;;  %v1174_v61 = vadd.f32 %v3421_v14, %v4854_v13  ;;  %v4888_v29 = vpop.f32.mrf.mxu1 }
 0x14e   : > { %v1259_v36 = vpop.f32.mrf.mxu0  ;;  %v3427_v26 = vadd.f32 %v4817_v56, %v4812_v4  ;;  %v3962_v4 = vld [vmem:[%s5465_s3 + $0x200] ss:$12 sps:$4 sm:$0xff]   ;;  %v3433_v14 = vadd.f32 %v4839_v41, %v4834_v18  ;;  %v3964_v41 = vld [vmem:[%s5465_s3 + $0x1d0] ss:$12 sps:$4 sm:$0xff]   ;;  %v3442_v21 = vadd.f32 %v4888_v29, %v4876_v55 }
 0x14f   : > { %v1368_v10 = vmax.f32 %v1126_v54, 0.0  ;;  %v1260_v47 = vadd.f32 %v1259_v36, %v1163_v1  ;;  %v4883_v37 = vpack.c.bf16 %v1367_v7, %v1364_v24  ;;  %v4901_v54 = vpop.f32.mrf.mxu1  ;;  %v1268_v7 = vadd.f32 %v3656_v3, %v1171_v39 }
 0x150   : > { %v3657_v0 = vpop.f32.mrf.mxu0  ;;  %v1182_v6 = vadd.f32 %v3427_v26, %v4854_v13  ;;  %v3439_v39 = vadd.f32 %v4871_v59, %v4864_v8  ;;  %v3966_v8 = vld [vmem:[%s5465_s3 + $0x1a0] ss:$12 sps:$4 sm:$0xff]  }
 0x151   : > { %v4881_v51 = vpack.c.bf16 %v1368_v10, %v1365_v25  ;;  %v1324_v50 = vmax.f32 %v1260_v47, 0.0  ;;  %v1271_v32 = vadd.f32 %v3657_v0, %v1174_v61  ;;  %v3444_v3 = vpop.f32.mrf.mxu1  ;;  %v1330_v36 = vmax.f32 %v1268_v7, 0.0  ;;  %v3967_v7 = vld [vmem:[%s5465_s3 + $0x188] ss:$12 sps:$4 sm:$0xff]  }
 0x152   : > { %v1262_v5 = vpop.f32.mrf.mxu0  ;;  %v3445_v26 = vadd.f32 %v3444_v3, %v4901_v54 }
 0x153   : > { %v1263_v63 = vadd.f32 %v1262_v5, %v1166_v46  ;;  %1993 = vmatprep.mubr.bf16.mxu1 %v4881_v51  ;;  %v3446_v0 = vpop.f32.mrf.mxu1  ;;  %v3436_v46 = vadd.f32 %v4849_v17, %v4843_v57 }
 0x154   : > { %1994 = vmatmul.mubr.bf16.gmra.mxu1 %v4883_v37  ;;  %v3660_v35 = vpop.f32.mrf.mxu0  ;;  %v1206_v29 = vadd.f32 %v3445_v26, %v4854_v13  ;;  %v3988_v26 = vld [vmem:[%s5467_s5 + $0x98] sm:$0xff]  }
 0x155   : > { %v1327_v20 = vmax.f32 %v1263_v63, 0.0  ;;  %2149 = vmatprep.mubr.bf16.mxu1 %v4673_v42  ;;  %v1333_v42 = vmax.f32 %v1271_v32, 0.0  ;;  %v3447_v47 = vpop.f32.mrf.mxu1  ;;  %v1195_v17 = vadd.f32 %v3436_v46, %v4854_v13 }
 0x156   : > { %v1275_v23 = vpop.f32.mrf.mxu0 }
 0x157   : > { %v4896_v16 = vpack.c.bf16 %v1327_v20, %v1324_v50  ;;  %v4915_v25 = vpack.c.bf16 %v1333_v42, %v1330_v36  ;;  %v1276_v10 = vadd.f32 %v1275_v23, %v1179_v12  ;;  %v3449_v20 = vpop.f32.mrf.mxu1 }
 0x158   : > { %v3661_v62 = vpop.f32.mrf.mxu0 }
 0x159   : > { %2037 = vmatmul.mubr.bf16.vlgmr.msra.gmra.mxu0 %v4896_v16  ;;  %v3450_v23 = vpop.f32.mrf.mxu1 }
 0x15a   : > { %3671 = vmatpush3.bf16.msra.mxu0 %v4610_v53  ;;  %2046 = vmatprep.mubr.bf16.mxu0 %v4072_v2  ;;  %v1278_v56 = vpop.f32.mrf.mxu0  ;;  %v3430_v53 = vadd.f32 %v4826_v28, %v4820_v45  ;;  %v1336_v45 = vmax.f32 %v1276_v10, 0.0  ;;  %v1190_v28 = vadd.f32 %v3433_v14, %v4854_v13 }
 0x15b   : > { %3672 = vmatprep.subr.bf16.mxu0 %v3961_v40  ;;  %v1279_v1 = vadd.f32 %v1278_v56, %v1182_v6 }
 0x15c   : > { %2150 = vmatmul.mubr.bf16.vlgmr.msra.gmra.mxu1 %v4680_v48  ;;  %v3963_v48 = vld [vmem:[%s5465_s3 + $0x1e8] ss:$12 sps:$4 sm:$0xff]   ;;  %v3664_v24 = vpop.f32.mrf.mxu0  ;;  %v1287_v61 = vadd.f32 %v3661_v62, %v1190_v28 }
 0x15d   : > { %2157 = vmatprep.mubr.bf16.mxu1 %v4703_v58  ;;  %v1187_v58 = vadd.f32 %v3430_v53, %v4854_v13  ;;  %v1339_v18 = vmax.f32 %v1279_v1, 0.0  ;;  %v3451_v53 = vadd.f32 %v3450_v23, %v3449_v20  ;;  %v3978_v20 = vld [vmem:[%s5467_s5 + $0x50] sm:$0xff]  }
 0x15e   : > { %3673 = vmatpush3.bf16.msra.mxu0 %v3961_v40  ;;  %v1291_v44 = vpop.f32.mrf.mxu0  ;;  %v1345_v57 = vmax.f32 %v1287_v61, 0.0  ;;  %v3985_v23 = vld [vmem:[%s5467_s5 + $0xb0] sm:$0xff]  }
 0x15f   : > { %3674 = vmatprep.subr.bf16.mxu0 %v3962_v4  ;;  %v1284_v5 = vadd.f32 %v3660_v35, %v1187_v58  ;;  %v4933_v63 = vpack.c.bf16 %v1339_v18, %v1336_v45  ;;  %v1198_v35 = vadd.f32 %v3439_v39, %v4854_v13  ;;  %v1292_v40 = vadd.f32 %v1291_v44, %v1195_v17  ;;  %v3984_v17 = vld [vmem:[%s5467_s5 + $0xb8] sm:$0xff]  }
 0x160   : > { %v3665_v50 = vpop.f32.mrf.mxu0  ;;  %3702 = vmatprep.subr.bf16.mxu1 %v3984_v17 }
 0x161   : > { %2047 = vmatmul.mubr.bf16.gmra.mxu0 %v4915_v25  ;;  %v1348_v55 = vmax.f32 %v1292_v40, 0.0  ;;  %v1303_v3 = vadd.f32 %v3665_v50, %v1206_v29  ;;  %3703 = vmatpush3.bf16.msra.mxu1 %v3984_v17  ;;  %v3989_v40 = vld [vmem:[%s5467_s5 + $0x90] sm:$0xff]  }
 0x162   : > { %2056 = vmatprep.mubr.bf16.mxu0 %v4072_v2  ;;  %3675 = vmatpush3.bf16.msra.mxu0 %v3962_v4  ;;  %v1294_v59 = vpop.f32.mrf.mxu0  ;;  %v3448_v4 = vadd.f32 %v3447_v47, %v3446_v0 }
 0x163   : > { %3676 = vmatprep.subr.bf16.mxu0 %v3963_v48  ;;  %v1295_v62 = vadd.f32 %v1294_v59, %v1198_v35  ;;  %v3981_v35 = vld [vmem:[%s5467_s5 + $0x8] sm:$0xff]   ;;  %v3983_v59 = vld [vmem:[%s5467_s5] sm:$0xff]   ;;  %3704 = vmatprep.subr.bf16.mxu1 %v3985_v23 }
 0x164   : > { %2158 = vmatmul.mubr.bf16.gmra.mxu1 %v4710_v33  ;;  %v3965_v33 = vld [vmem:[%s5465_s3 + $0x1b8] ss:$12 sps:$4 sm:$0xff]   ;;  %v3668_v42 = vpop.f32.mrf.mxu0  ;;  %v1211_v58 = vadd.f32 %v3448_v4, %v4854_v13 }
 0x165   : > { %2165 = vmatprep.mubr.bf16.mxu1 %v4737_v19  ;;  %v1342_v19 = vmax.f32 %v1284_v5, 0.0  ;;  %v1351_v54 = vmax.f32 %v1295_v62, 0.0  ;;  %3705 = vmatpush3.bf16.msra.mxu1 %v3985_v23 }
 0x166   : > { %3677 = vmatpush3.bf16.msra.mxu0 %v3963_v48  ;;  %v1307_v6 = vpop.f32.mrf.mxu0  ;;  %v1357_v48 = vmax.f32 %v1303_v3, 0.0 }
 0x167   : > { %3678 = vmatprep.subr.bf16.mxu0 %v3964_v41  ;;  %v4951_v32 = vpack.c.bf16 %v1345_v57, %v1342_v19  ;;  %v1384_v36 = vpack.c.bf16 %v1351_v54, %v1348_v55  ;;  %v1308_v18 = vadd.f32 %v1307_v6, %v1211_v58  ;;  %v3979_v19 = vld [vmem:[%s5467_s5 + $0x10] sm:$0xff]   ;;  %v3980_v57 = vld [vmem:[%s5467_s5 + $0x48] sm:$0xff]  }
 0x168   : > { %v3669_v10 = vpop.f32.mrf.mxu0 }
 0x169   : > { %2057 = vmatmul.mubr.bf16.gmra.mxu0 %v4933_v63  ;;  %v1360_v47 = vmax.f32 %v1308_v18, 0.0 }
 0x16a   : > { %2066 = vmatprep.mubr.bf16.mxu0 %v4072_v2  ;;  %3679 = vmatpush3.bf16.msra.mxu0 %v3964_v41 }
 0x16b   : > { %3680 = vmatprep.subr.bf16.mxu0 %v3965_v33 }
 0x16c   : > { %2166 = vmatmul.mubr.bf16.gmra.mxu1 %v4744_v22  ;;  %v3452_v22 = vpop.f32.mrf.mxu1 }
 0x16d   : > { %2173 = vmatprep.mubr.bf16.mxu1 %v4771_v49  ;;  %v1203_v49 = vadd.f32 %v3442_v21, %v4854_v13  ;;  %v3986_v21 = vld [vmem:[%s5467_s5 + $0xa8] sm:$0xff]  }
 0x16e   : > { %3681 = vmatpush3.bf16.msra.mxu0 %v3965_v33  ;;  %v3453_v12 = vpop.f32.mrf.mxu1  ;;  %3706 = vmatprep.subr.bf16.mxu1 %v3986_v21 }
 0x16f   : > { %3682 = vmatprep.subr.bf16.mxu0 %v3966_v8  ;;  %v1300_v56 = vadd.f32 %v3664_v24, %v1203_v49  ;;  %v3454_v24 = vadd.f32 %v3453_v12, %v3452_v22  ;;  %3707 = vmatpush3.bf16.msra.mxu1 %v3986_v21  ;;  %v3991_v49 = vld [vmem:[%s5467_s5 + $0x80] sm:$0xff]  }
 0x170   : > { %v3455_v14 = vpop.f32.mrf.mxu1 }
 0x171   : > { %2067 = vmatmul.mubr.bf16.gmra.mxu0 %v4951_v32  ;;  %v1354_v1 = vmax.f32 %v1300_v56, 0.0  ;;  %v1219_v44 = vadd.f32 %v3454_v24, %v4854_v13 }
 0x172   : > { %2076 = vmatprep.mubr.bf16.mxu0 %v4072_v2  ;;  %3683 = vmatpush3.bf16.msra.mxu0 %v3966_v8  ;;  %v3456_v45 = vpop.f32.mrf.mxu1  ;;  %v3982_v8 = vld [vmem:[%s5467_s5 + $0x40] sm:$0xff]  }
 0x173   : > { %3684 = vmatprep.subr.bf16.mxu0 %v3967_v7  ;;  %v1387_v0 = vpack.c.bf16 %v1357_v48, %v1354_v1  ;;  %v3457_v28 = vadd.f32 %v3456_v45, %v3455_v14 }
 0x174   : > { %2174 = vmatmul.mubr.bf16.gmra.mxu1 %v4778_v52  ;;  %v1214_v52 = vadd.f32 %v3451_v53, %v4854_v13 }
 0x175   : > { %2181 = vmatprep.mubr.bf16.mxu1 %v4802_v34  ;;  %v1310_v34 = vpop.f32.mrf.mxu0  ;;  %v1222_v46 = vadd.f32 %v3457_v28, %v4854_v13  ;;  %v3971_v13 = vld [vmem:[%s5467_s5 + $0x30] sm:$0xff]  }
 0x176   : > { %3685 = vmatpush3.bf16.msra.mxu0 %v3967_v7  ;;  %v1311_v41 = vadd.f32 %v1310_v34, %v1214_v52  ;;  %v3990_v7 = vld [vmem:[%s5467_s5 + $0x88] sm:$0xff]  }
 0x177   : > { %v1319_v61 = vadd.f32 %v3669_v10, %v1222_v46 }
 0x178   : > { %v1363_v5 = vmax.f32 %v1311_v41, 0.0 }
 0x179   : > { %2077 = vmatmul.mubr.bf16.gmra.mxu0 %v1384_v36  ;;  %v1369_v50 = vmax.f32 %v1319_v61, 0.0 }
 0x17a   : > { %2086 = vmatprep.mubr.bf16.mxu0 %v4072_v2  ;;  %v1390_v39 = vpack.c.bf16 %v1363_v5, %v1360_v47  ;;  %v5098_v5 = vld [vmem:[%s5466_s4] sm:$0x7] }
 0x17c   : > { %2182 = vmatmul.mubr.bf16.gmra.mxu1 %v4806_v38  ;;  %v3968_v38 = vld [vmem:[%s5467_s5 + $0x78] sm:$0xff]  }
 0x17d   : > { %2189 = vmatprep.mubr.bf16.mxu1 %v4824_v27  ;;  %v1316_v27 = vadd.f32 %v3668_v42, %v1219_v44  ;;  %3550 = vmatprep.subr.bf16.mxu0 %v3968_v38 }
 0x17f   : > { %v1366_v33 = vmax.f32 %v1316_v27, 0.0  ;;  %v5105_v27 = vrot.slane %v5098_v5, %v548_v11 }
 0x181   : > { %2087 = vmatmul.mubr.bf16.gmra.mxu0 %v1387_v0 }
 0x182   : > { %2096 = vmatprep.mubr.bf16.mxu0 %v4072_v2 }
 0x184   : > { %2190 = vmatmul.mubr.bf16.gmra.mxu1 %v4828_v31  ;;  %v1393_v31 = vpack.c.bf16 %v1369_v50, %v1366_v33 }
 0x185   : > { %2197 = vmatprep.mubr.bf16.mxu1 %v4847_v30  ;;  %v3969_v30 = vld [vmem:[%s5467_s5 + $0x38] sm:$0xff]  }
 0x189   : > { %2097 = vmatmul.mubr.bf16.gmra.mxu0 %v1390_v39 }
 0x18a   : > { %2106 = vmatprep.mubr.bf16.mxu0 %v4072_v2  ;;  %v3970_v2 = vld [vmem:[%s5467_s5 + $0x70] sm:$0xff]  }
 0x18c   : > { %2198 = vmatmul.mubr.bf16.gmra.mxu1 %v4856_v15  ;;  %v3972_v15 = vld [vmem:[%s5467_s5 + $0x68] sm:$0xff]  }
 0x18d   : > { %2205 = vmatprep.mubr.bf16.mxu1 %v4881_v51  ;;  %v3973_v51 = vld [vmem:[%s5467_s5 + $0x28] sm:$0xff]  }
 0x191   : > { %2107 = vmatmul.mubr.bf16.gmra.mxu0 %v1393_v31 }
 0x192   : > { %3686 = vmatprep.mubr.bf16.mxu0 %v4896_v16  ;;  %v3975_v16 = vld [vmem:[%s5467_s5 + $0x20] sm:$0xff]  }
 0x194   : > { %2206 = vmatmul.mubr.bf16.gmra.mxu1 %v4883_v37  ;;  %v3974_v37 = vld [vmem:[%s5467_s5 + $0x60] sm:$0xff]  }
 0x199   : > { %3687 = vmatmul.mubr.bf16.vlgmr.msra.gmra.mxu0 %v4915_v25  ;;  %v3976_v25 = vld [vmem:[%s5467_s5 + $0x58] sm:$0xff]  }
 0x19a   : > { %3690 = vmatprep.mubr.bf16.mxu0 %v4933_v63  ;;  %3551 = vmatpush3.bf16.msra.mxu0 %v3969_v30  ;;  %v3977_v63 = vld [vmem:[%s5467_s5 + $0x18] sm:$0xff]  }
 0x19b   : > { %3552 = vmatprep.subr.bf16.mxu0 %v3970_v2 }
 0x19e   : > { %3553 = vmatpush3.bf16.msra.mxu0 %v3971_v13 }
 0x19f   : > { %3554 = vmatprep.subr.bf16.mxu0 %v3972_v15 }
 0x1a1   : > { %3691 = vmatmul.mubr.bf16.gmra.mxu0 %v4951_v32  ;;  %v3987_v32 = vld [vmem:[%s5467_s5 + $0xa0] sm:$0xff]  }
 0x1a2   : > { %3694 = vmatprep.mubr.bf16.mxu0 %v1384_v36  ;;  %3555 = vmatpush3.bf16.msra.mxu0 %v3973_v51 }
 0x1a3   : > { %3556 = vmatprep.subr.bf16.mxu0 %v3974_v37  ;;  %3708 = vmatprep.subr.bf16.mxu1 %v3987_v32 }
 0x1a4   : > { %3709 = vmatpush3.bf16.msra.mxu1 %v3987_v32 }
 0x1a5   : > { %3710 = vmatprep.subr.bf16.mxu1 %v3988_v26 }
 0x1a6   : > { %3557 = vmatpush3.bf16.msra.mxu0 %v3975_v16 }
 0x1a7   : > { %3558 = vmatprep.subr.bf16.mxu0 %v3976_v25 }
 0x1a8   : > { %3711 = vmatpush3.bf16.msra.mxu1 %v3988_v26 }
 0x1a9   : > { %3695 = vmatmul.mubr.bf16.gmra.mxu0 %v1387_v0  ;;  %3712 = vmatprep.subr.bf16.mxu1 %v3989_v40 }
 0x1aa   : > { %3698 = vmatprep.mubr.bf16.mxu0 %v1390_v39  ;;  %3559 = vmatpush3.bf16.msra.mxu0 %v3977_v63  ;;  %v5112_v39 = vrot.slane %v5098_v5, %v544_v60 }
 0x1ab   : > { %3560 = vmatprep.subr.bf16.mxu0 %v3978_v20 }
 0x1ac   : > { %3713 = vmatpush3.bf16.msra.mxu1 %v3989_v40 }
 0x1ad   : > { %3714 = vmatprep.subr.bf16.mxu1 %v3990_v7 }
 0x1ae   : > { %3561 = vmatpush3.bf16.msra.mxu0 %v3979_v19 }
 0x1af   : > { %3562 = vmatprep.subr.bf16.mxu0 %v3980_v57 }
 0x1b0   : > { %3715 = vmatpush3.bf16.msra.mxu1 %v3990_v7 }
 0x1b1   : > { %3699 = vmatmul.mubr.bf16.gmra.mxu0 %v1393_v31  ;;  %3716 = vmatprep.subr.bf16.mxu1 %v3991_v49 }
 0x1b2   : > { %3563 = vmatpush3.bf16.msra.mxu0 %v3981_v35 }
 0x1b3   : > { %3564 = vmatprep.subr.bf16.mxu0 %v3982_v8 }
 0x1b4   : > { %3717 = vmatpush3.bf16.msra.mxu1 %v3991_v49 }
 0x1b6   : > { %3565 = vmatpush3.bf16.msra.mxu0 %v3983_v59 }
 0x1dc   : > { %v1925_v62 = vpop.f32.mrf.mxu1 }
 0x1dd   : > { %v1926_v11 = vadd.f32 %v1925_v62, %v5112_v39 }
 0x1de   : > { %v1927_v22 = vpop.f32.mrf.mxu1 }
 0x1df   : > { %v1928_v30 = vadd.f32 %v1927_v22, %v5105_v27 }
 0x1e0   : > { %v1929_v42 = vpop.f32.mrf.mxu1 }
 0x1e1   : > { %v1930_v2 = vadd.f32 %v1929_v42, %v5112_v39 }
 0x1e2   : > { %v1931_v55 = vpop.f32.mrf.mxu1 }
 0x1e3   : > { %v1932_v51 = vadd.f32 %v1931_v55, %v5105_v27 }
 0x1e4   : > { %v1935_v29 = vpop.f32.mrf.mxu1 }
 0x1e5   : > { %v1936_v7 = vadd.f32 %v1935_v29, %v5112_v39 }
 0x1e6   : > { %v1937_v54 = vpop.f32.mrf.mxu1 }
 0x1e7   : > { %v1938_v32 = vadd.f32 %v1937_v54, %v5105_v27 }
 0x1e8   : > { %v1939_v12 = vpop.f32.mrf.mxu1 }
 0x1e9   : > { %v1940_v26 = vadd.f32 %v1939_v12, %v5112_v39 }
 0x1ea   : > { %v1941_v6 = vpop.f32.mrf.mxu1 }
 0x1eb   : > { %v1942_v49 = vadd.f32 %v1941_v6, %v5105_v27 }
 0x1ec   : > { %v5053_v4 = vpop.f32.mrf.mxu1 }
 0x1ee   : > { %v5055_v56 = vpop.f32.mrf.mxu1 }
 0x1ef   : > { %v1948_v6 = vadd.f32 %v5055_v56, %v5105_v27 }
 0x1f0   : > { %v5057_v3 = vpop.f32.mrf.mxu1 }
 0x1f2   : > { %v5059_v36 = vpop.f32.mrf.mxu1 }
 0x1f4   : > { %v5061_v53 = vpop.f32.mrf.mxu1 }
 0x1f6   : > { %v5063_v14 = vpop.f32.mrf.mxu1 }
 0x1f8   : > { %v5065_v10 = vpop.f32.mrf.mxu1 }
 0x1fa   : > { %v5067_v1 = vpop.f32.mrf.mxu1 }
 0x1fc   : > { %v5069_v48 = vpop.f32.mrf.mxu1 }
 0x1fe   : > { %v5071_v58 = vpop.f32.mrf.mxu1 }
 0x200   : > { %v5073_v52 = vpop.f32.mrf.mxu1 }
 0x202   : > { %v5075_v45 = vpop.f32.mrf.mxu1 }
 0x204   : > { %v5077_v34 = vpop.f32.mrf.mxu1 }
 0x206   : > { %v5079_v24 = vpop.f32.mrf.mxu1 }
 0x208   : > { %v5081_v0 = vpop.f32.mrf.mxu1 }
 0x20a   : > { %v5083_v28 = vpop.f32.mrf.mxu1 }
 0x20c   : > { %v5085_v18 = vpop.f32.mrf.mxu1 }
 0x20e   : > { %v5087_v41 = vpop.f32.mrf.mxu1 }
 0x210   : > { %v5089_v44 = vpop.f32.mrf.mxu1 }
 0x212   : > { %v5091_v47 = vpop.f32.mrf.mxu1 }
 0x214   : > { %v5093_v46 = vpop.f32.mrf.mxu1 }
 0x216   : > { %v5100_v38 = vpop.f32.mrf.mxu1 }
 0x218   : > { %v5107_v61 = vpop.f32.mrf.mxu1 }
 0x219   : > { %v2038_v33 = vpop.f32.mrf.mxu0 }
 0x21a   : > { %v5114_v50 = vpop.f32.mrf.mxu1  ;;  %v2039_v60 = vadd.f32 %v2038_v33, %v1926_v11 }
 0x21b   : > { %v2040_v31 = vpop.f32.mrf.mxu0 }
 0x21c   : > { %v5118_v13 = vpop.f32.mrf.mxu1  ;;  %v2041_v37 = vadd.f32 %v2040_v31, %v1928_v30  ;;  %v2311_v23 = vmax.f32 %v2039_v60, 0.0 }
 0x21d   : > { %v2042_v15 = vpop.f32.mrf.mxu0 }
 0x21e   : > { %v2043_v16 = vadd.f32 %v2042_v15, %v1930_v2  ;;  %v5122_v25 = vpop.f32.mrf.mxu1  ;;  %v2312_v35 = vmax.f32 %v2041_v37, 0.0 }
 0x21f   : > { %v2044_v63 = vpop.f32.mrf.mxu0 }
 0x220   : > { %v2045_v20 = vadd.f32 %v2044_v63, %v1932_v51  ;;  %v5124_v19 = vpop.f32.mrf.mxu1  ;;  %v2314_v57 = vmax.f32 %v2043_v16, 0.0  ;;  %v1950_v63 = vadd.f32 %v5057_v3, %v5112_v39 }
 0x221   : > { %v2048_v17 = vpop.f32.mrf.mxu0 }
 0x222   : > { %v2315_v8 = vmax.f32 %v2045_v20, 0.0  ;;  %v5126_v59 = vpop.f32.mrf.mxu1  ;;  %v2359_v22 = vpack.c.bf16 %v2314_v57, %v2311_v23  ;;  %v2049_v30 = vadd.f32 %v2048_v17, %v1936_v7  ;;  %v1946_v17 = vadd.f32 %v5053_v4, %v5112_v39 }
 0x223   : > { %v2050_v21 = vpop.f32.mrf.mxu0  ;;  %v1952_v23 = vadd.f32 %v5059_v36, %v5105_v27  ;;  %v1958_v36 = vadd.f32 %v5063_v14, %v5105_v27 }
 0x224   : > { %v2360_v40 = vpack.c.bf16 %v2315_v8, %v2312_v35  ;;  %v5130_v62 = vpop.f32.mrf.mxu1  ;;  %v2051_v55 = vadd.f32 %v2050_v21, %v1938_v32  ;;  %v2317_v16 = vmax.f32 %v2049_v30, 0.0 }
 0x225   : > { %v2052_v42 = vpop.f32.mrf.mxu0 }
 0x226   : > { %v2053_v33 = vadd.f32 %v2052_v42, %v1940_v26  ;;  %v5134_v31 = vpop.f32.mrf.mxu1  ;;  %2614 = vmatprep.mubr.bf16.mxu0 %v2360_v40  ;;  %v2318_v51 = vmax.f32 %v2051_v55, 0.0 }
 0x227   : > { %v2054_v2 = vpop.f32.mrf.mxu0  ;;  %2615 = vmatmul.mubr.bf16.vlgmr.msra.gmra.mxu0 %v2359_v22 }
 0x228   : > { %v2055_v54 = vadd.f32 %v2054_v2, %v1942_v49  ;;  %v5136_v11 = vpop.f32.mrf.mxu1  ;;  %v2320_v12 = vmax.f32 %v2053_v33, 0.0  ;;  %v1960_v2 = vadd.f32 %v5065_v10, %v5112_v39 }
 0x229   : > { %v2058_v15 = vpop.f32.mrf.mxu0 }
 0x22a   : > { %v2321_v37 = vmax.f32 %v2055_v54, 0.0  ;;  %v5138_v29 = vpop.f32.mrf.mxu1  ;;  %v2362_v35 = vpack.c.bf16 %v2320_v12, %v2317_v16  ;;  %v2059_v56 = vadd.f32 %v2058_v15, %v1946_v17  ;;  %v1956_v15 = vadd.f32 %v5061_v53, %v5112_v39 }
 0x22b   : > { %v2060_v60 = vpop.f32.mrf.mxu0  ;;  %v1962_v16 = vadd.f32 %v5067_v1, %v5105_v27  ;;  %v1968_v1 = vadd.f32 %v5071_v58, %v5105_v27 }
 0x22c   : > { %v2363_v20 = vpack.c.bf16 %v2321_v37, %v2318_v51  ;;  %v5144_v57 = vpop.f32.mrf.mxu1  ;;  %v2061_v21 = vadd.f32 %v2060_v60, %v1948_v6  ;;  %v2323_v33 = vmax.f32 %v2059_v56, 0.0 }
 0x22d   : > { %v2062_v8 = vpop.f32.mrf.mxu0 }
 0x22e   : > { %v2063_v32 = vadd.f32 %v2062_v8, %v1950_v63  ;;  %v5150_v26 = vpop.f32.mrf.mxu1  ;;  %2622 = vmatprep.mubr.bf16.mxu0 %v2363_v20  ;;  %v2324_v49 = vmax.f32 %v2061_v21, 0.0 }
 0x22f   : > { %v2064_v40 = vpop.f32.mrf.mxu0  ;;  %2623 = vmatmul.mubr.bf16.gmra.mxu0 %v2362_v35 }
 0x230   : > { %v2065_v3 = vadd.f32 %v2064_v40, %v1952_v23  ;;  %v5152_v7 = vpop.f32.mrf.mxu1  ;;  %v2326_v22 = vmax.f32 %v2063_v32, 0.0  ;;  %v1970_v40 = vadd.f32 %v5073_v52, %v5112_v39 }
 0x231   : > { %v2068_v42 = vpop.f32.mrf.mxu0 }
 0x232   : > { %v2327_v4 = vmax.f32 %v2065_v3, 0.0  ;;  %v5154_v55 = vpop.f32.mrf.mxu1  ;;  %v2365_v51 = vpack.c.bf16 %v2326_v22, %v2323_v33  ;;  %v2069_v14 = vadd.f32 %v2068_v42, %v1956_v15  ;;  %v1966_v42 = vadd.f32 %v5069_v48, %v5112_v39 }
 0x233   : > { %v2070_v30 = vpop.f32.mrf.mxu0  ;;  %v1972_v33 = vadd.f32 %v5075_v45, %v5105_v27  ;;  %v1978_v45 = vadd.f32 %v5079_v24, %v5105_v27 }
 0x234   : > { %v2366_v54 = vpack.c.bf16 %v2327_v4, %v2324_v49  ;;  %v5160_v12 = vpop.f32.mrf.mxu1  ;;  %v2071_v60 = vadd.f32 %v2070_v30, %v1958_v36  ;;  %v2329_v32 = vmax.f32 %v2069_v14, 0.0 }
 0x235   : > { %v2072_v37 = vpop.f32.mrf.mxu0 }
 0x236   : > { %v2073_v6 = vadd.f32 %v2072_v37, %v1960_v2  ;;  %v5166_v63 = vpop.f32.mrf.mxu1  ;;  %2630 = vmatprep.mubr.bf16.mxu0 %v2366_v54  ;;  %v2330_v23 = vmax.f32 %v2071_v60, 0.0 }
 0x237   : > { %v2074_v20 = vpop.f32.mrf.mxu0  ;;  %2631 = vmatmul.mubr.bf16.gmra.mxu0 %v2365_v51 }
 0x238   : > { %v2075_v10 = vadd.f32 %v2074_v20, %v1962_v16  ;;  %v5168_v17 = vpop.f32.mrf.mxu1  ;;  %v2332_v35 = vmax.f32 %v2073_v6, 0.0  ;;  %v1980_v20 = vadd.f32 %v5081_v0, %v5112_v39 }
 0x239   : > { %v2078_v8 = vpop.f32.mrf.mxu0 }
 0x23a   : > { %v2333_v53 = vmax.f32 %v2075_v10, 0.0  ;;  %v5170_v21 = vpop.f32.mrf.mxu1  ;;  %v2368_v49 = vpack.c.bf16 %v2332_v35, %v2329_v32  ;;  %v2079_v58 = vadd.f32 %v2078_v8, %v1966_v42  ;;  %v1976_v8 = vadd.f32 %v5077_v34, %v5112_v39 }
 0x23b   : > { %v2080_v56 = vpop.f32.mrf.mxu0  ;;  %v1982_v32 = vadd.f32 %v5083_v28, %v5105_v27  ;;  %v1988_v28 = vadd.f32 %v5087_v41, %v5105_v27 }
 0x23c   : > { %v2369_v3 = vpack.c.bf16 %v2333_v53, %v2330_v23  ;;  %v5176_v22 = vpop.f32.mrf.mxu1  ;;  %v2081_v30 = vadd.f32 %v2080_v56, %v1968_v1  ;;  %v2335_v6 = vmax.f32 %v2079_v58, 0.0  ;;  %v1990_v58 = vadd.f32 %v5089_v44, %v5112_v39 }
 0x23d   : > { %v2082_v4 = vpop.f32.mrf.mxu0 }
 0x23e   : > { %v2083_v36 = vadd.f32 %v2082_v4, %v1970_v40  ;;  %v5182_v2 = vpop.f32.mrf.mxu1  ;;  %2638 = vmatprep.mubr.bf16.mxu0 %v2369_v3  ;;  %v2336_v16 = vmax.f32 %v2081_v30, 0.0 }
 0x23f   : > { %v2084_v54 = vpop.f32.mrf.mxu0  ;;  %2639 = vmatmul.mubr.bf16.gmra.mxu0 %v2368_v49 }
 0x240   : > { %v2085_v52 = vadd.f32 %v2084_v54, %v1972_v33  ;;  %v5184_v15 = vpop.f32.mrf.mxu1  ;;  %v2338_v51 = vmax.f32 %v2083_v36, 0.0 }
 0x241   : > { %v2088_v37 = vpop.f32.mrf.mxu0 }
 0x242   : > { %v2339_v48 = vmax.f32 %v2085_v52, 0.0  ;;  %v5186_v60 = vpop.f32.mrf.mxu1  ;;  %v2371_v23 = vpack.c.bf16 %v2338_v51, %v2335_v6  ;;  %v2089_v24 = vadd.f32 %v2088_v37, %v1976_v8  ;;  %v1986_v52 = vadd.f32 %v5085_v18, %v5112_v39 }
 0x243   : > { %v2090_v14 = vpop.f32.mrf.mxu0 }
 0x244   : > { %v2372_v10 = vpack.c.bf16 %v2339_v48, %v2336_v16  ;;  %v5192_v35 = vpop.f32.mrf.mxu1  ;;  %v2091_v56 = vadd.f32 %v2090_v14, %v1978_v45  ;;  %v2341_v30 = vmax.f32 %v2089_v24, 0.0  ;;  %v1992_v48 = vadd.f32 %v5091_v47, %v5105_v27 }
 0x245   : > { %v2092_v53 = vpop.f32.mrf.mxu0  ;;  %v2000_v47 = vadd.f32 %v5107_v61, %v5112_v39  ;;  %v1996_v24 = vadd.f32 %v5093_v46, %v5112_v39  ;;  %v3497_v61 = vadd.f32 %v5138_v29, %v5136_v11  ;;  %v5231_v39 = vrot.slane %v5098_v5, %v552_v43 }
 0x246   : > { %v2093_v1 = vadd.f32 %v2092_v53, %v1980_v20  ;;  %v5198_v40 = vpop.f32.mrf.mxu1  ;;  %2646 = vmatprep.mubr.bf16.mxu0 %v2372_v10  ;;  %v2342_v33 = vmax.f32 %v2091_v56, 0.0  ;;  %v1998_v56 = vadd.f32 %v5100_v38, %v5105_v27  ;;  %v3488_v38 = vadd.f32 %v5122_v25, %v5118_v13 }
 0x247   : > { %v2094_v3 = vpop.f32.mrf.mxu0  ;;  %2647 = vmatmul.mubr.bf16.gmra.mxu0 %v2371_v23  ;;  %v2163_v43 = vadd.f32 %v3497_v61, %v5231_v39 }
 0x248   : > { %v2095_v0 = vadd.f32 %v2094_v3, %v1982_v32  ;;  %v2344_v42 = vmax.f32 %v2093_v1, 0.0  ;;  %v5200_v49 = vpop.f32.mrf.mxu1  ;;  %v2152_v9 = vadd.f32 %v3488_v38, %v5231_v39 }
 0x249   : > { %v2098_v4 = vpop.f32.mrf.mxu0 }
 0x24a   : > { %v2345_v34 = vmax.f32 %v2095_v0, 0.0  ;;  %v2374_v51 = vpack.c.bf16 %v2344_v42, %v2341_v30  ;;  %v5208_v37 = vpop.f32.mrf.mxu1  ;;  %v2099_v45 = vadd.f32 %v2098_v4, %v1986_v52  ;;  %v2002_v4 = vadd.f32 %v5114_v50, %v5105_v27 }
 0x24b   : > { %v2100_v36 = vpop.f32.mrf.mxu0  ;;  %v3494_v27 = vadd.f32 %v5134_v31, %v5130_v62 }
 0x24c   : > { %v2375_v54 = vpack.c.bf16 %v2345_v34, %v2342_v33  ;;  %v2101_v6 = vadd.f32 %v2100_v36, %v1988_v28  ;;  %v5212_v10 = vpop.f32.mrf.mxu1  ;;  %v2347_v53 = vmax.f32 %v2099_v45, 0.0  ;;  %v3509_v45 = vadd.f32 %v5170_v21, %v5168_v17 }
 0x24d   : > { %v2102_v16 = vpop.f32.mrf.mxu0  ;;  %v2160_v62 = vadd.f32 %v3494_v27, %v5231_v39 }
 0x24e   : > { %v2103_v14 = vadd.f32 %v2102_v16, %v1990_v58  ;;  %2654 = vmatprep.mubr.bf16.mxu0 %v2375_v54  ;;  %v2348_v23 = vmax.f32 %v2101_v6, 0.0  ;;  %v5220_v0 = vpop.f32.mrf.mxu1  ;;  %v3491_v54 = vadd.f32 %v5126_v59, %v5124_v19 }
 0x24f   : > { %v2104_v20 = vpop.f32.mrf.mxu0  ;;  %2655 = vmatmul.mubr.bf16.gmra.mxu0 %v2374_v51 }
 0x250   : > { %v2105_v41 = vadd.f32 %v2104_v20, %v1992_v48  ;;  %v2350_v44 = vmax.f32 %v2103_v14, 0.0  ;;  %v5235_v50 = vpop.f32.mrf.mxu1  ;;  %v2155_v19 = vadd.f32 %v3491_v54, %v5231_v39  ;;  %v3500_v14 = vadd.f32 %v5150_v26, %v5144_v57 }
 0x251   : > { %v2108_v8 = vpop.f32.mrf.mxu0  ;;  %v2179_v26 = vadd.f32 %v3509_v45, %v5231_v39 }
 0x252   : > { %v2351_v18 = vmax.f32 %v2105_v41, 0.0  ;;  %v2377_v3 = vpack.c.bf16 %v2350_v44, %v2347_v53  ;;  %v2109_v30 = vadd.f32 %v2108_v8, %v1996_v24  ;;  %v5241_v5 = vpop.f32.mrf.mxu1  ;;  %v3506_v41 = vadd.f32 %v5166_v63, %v5160_v12 }
 0x253   : > { %v2110_v32 = vpop.f32.mrf.mxu0  ;;  %v2168_v57 = vadd.f32 %v3500_v14, %v5231_v39 }
 0x254   : > { %v2378_v1 = vpack.c.bf16 %v2351_v18, %v2348_v23  ;;  %v2111_v33 = vadd.f32 %v2110_v32, %v1998_v56  ;;  %v2353_v52 = vmax.f32 %v2109_v30, 0.0  ;;  %v3528_v44 = vpop.f32.mrf.mxu1  ;;  %v3503_v18 = vadd.f32 %v5154_v55, %v5152_v7 }
 0x255   : > { %v2112_v42 = vpop.f32.mrf.mxu0  ;;  %v2176_v24 = vadd.f32 %v3506_v41, %v5231_v39  ;;  %v3518_v30 = vadd.f32 %v5198_v40, %v5192_v35 }
 0x256   : > { %v2113_v34 = vadd.f32 %v2112_v42, %v2000_v47  ;;  %2662 = vmatprep.mubr.bf16.mxu0 %v2378_v1  ;;  %v2354_v13 = vmax.f32 %v2111_v33, 0.0  ;;  %v3529_v17 = vpop.f32.mrf.mxu1  ;;  %v2171_v42 = vadd.f32 %v3503_v18, %v5231_v39  ;;  %v3521_v33 = vadd.f32 %v5208_v37, %v5200_v49 }
 0x257   : > { %v2114_v36 = vpop.f32.mrf.mxu0  ;;  %2663 = vmatmul.mubr.bf16.gmra.mxu0 %v2377_v3 }
 0x258   : > { %v2115_v46 = vadd.f32 %v2114_v36, %v2002_v4  ;;  %v2356_v28 = vmax.f32 %v2113_v34, 0.0  ;;  %v3512_v4 = vadd.f32 %v5182_v2, %v5176_v22  ;;  %v3531_v36 = vpop.f32.mrf.mxu1  ;;  %v2195_v2 = vadd.f32 %v3521_v33, %v5231_v39 }
 0x259   : > { %v3688_v58 = vpop.f32.mrf.mxu0 }
 0x25a   : > { %v2357_v25 = vmax.f32 %v2115_v46, 0.0  ;;  %v2380_v51 = vpack.c.bf16 %v2356_v28, %v2353_v52  ;;  %v2257_v59 = vadd.f32 %v3688_v58, %v2160_v62  ;;  %v3515_v46 = vadd.f32 %v5186_v60, %v5184_v15  ;;  %v3532_v49 = vpop.f32.mrf.mxu1 }
 0x25b   : > { %v2248_v11 = vpop.f32.mrf.mxu0  ;;  %v2184_v22 = vadd.f32 %v3512_v4, %v5231_v39 }
 0x25c   : > { %v2381_v29 = vpack.c.bf16 %v2357_v25, %v2354_v13  ;;  %v2249_v16 = vadd.f32 %v2248_v11, %v2152_v9  ;;  %v2319_v56 = vmax.f32 %v2257_v59, 0.0  ;;  %v2192_v25 = vadd.f32 %v3518_v30, %v5231_v39 }
 0x25d   : > { %v3689_v31 = vpop.f32.mrf.mxu0  ;;  %v2187_v11 = vadd.f32 %v3515_v46, %v5231_v39  ;;  %v3533_v9 = vadd.f32 %v3532_v49, %v3531_v36 }
 0x25e   : > { %v2260_v48 = vadd.f32 %v3689_v31, %v2163_v43  ;;  %2670 = vmatprep.mubr.bf16.mxu0 %v2381_v29  ;;  %v2313_v53 = vmax.f32 %v2249_v16, 0.0  ;;  %v3524_v29 = vadd.f32 %v5220_v0, %v5212_v10  ;;  %v3527_v16 = vadd.f32 %v5241_v5, %v5235_v50  ;;  %v3992_v5 = vld [vmem:[%s5469_s7 + $0x38] sm:$0xff]  }
 0x25f   : > { %v2251_v6 = vpop.f32.mrf.mxu0  ;;  %2671 = vmatmul.mubr.bf16.gmra.mxu0 %v2380_v51  ;;  %v3530_v51 = vadd.f32 %v3529_v17, %v3528_v44  ;;  %3734 = vmatprep.subr.bf16.mxu0 %v3992_v5  ;;  %v3994_v17 = vld [vmem:[%s5469_s7 + $0x28] sm:$0xff]  }
 0x260   : > { %v2252_v20 = vadd.f32 %v2251_v6, %v2155_v19  ;;  %v2322_v8 = vmax.f32 %v2260_v48, 0.0  ;;  %v2200_v45 = vadd.f32 %v3524_v29, %v5231_v39  ;;  %3766 = vmatprep.subr.bf16.mxu1 %v3992_v5  ;;  %3735 = vmatpush3.bf16.msra.mxu0 %v3992_v5 }
 0x261   : > { %v3692_v23 = vpop.f32.mrf.mxu0  ;;  %v2208_v10 = vadd.f32 %v3530_v51, %v5231_v39  ;;  %v5310_v51 = vld [vmem:[%s5468_s6] ss:$0 sm:$0xff] }
 0x262   : > { %v2316_v32 = vmax.f32 %v2252_v20, 0.0  ;;  %v2364_v21 = vpack.c.bf16 %v2322_v8, %v2319_v56  ;;  %v2273_v7 = vadd.f32 %v3692_v23, %v2176_v24  ;;  %v2211_v20 = vadd.f32 %v3533_v9, %v5231_v39  ;;  %v3996_v24 = vld [vmem:[%s5469_s7 + $0x18] sm:$0xff]  }
 0x263   : > { %v2264_v47 = vpop.f32.mrf.mxu0  ;;  %v2203_v23 = vadd.f32 %v3527_v16, %v5231_v39  ;;  %v3993_v39 = vld [vmem:[%s5469_s7 + $0x30] sm:$0xff]  }
 0x264   : > { %v2361_v1 = vpack.c.bf16 %v2316_v32, %v2313_v53  ;;  %v2265_v63 = vadd.f32 %v2264_v47, %v2168_v57  ;;  %v2331_v58 = vmax.f32 %v2273_v7, 0.0  ;;  %3736 = vmatprep.subr.bf16.mxu0 %v3993_v39 }
 0x265   : > { %v3693_v12 = vpop.f32.mrf.mxu0  ;;  %3737 = vmatpush3.bf16.msra.mxu0 %v3993_v39 }
 0x266   : > { %v2276_v3 = vadd.f32 %v3693_v12, %v2179_v26  ;;  %3718 = vmatprep.mubr.bf16.mxu1 %v2361_v1  ;;  %v2325_v27 = vmax.f32 %v2265_v63, 0.0  ;;  %3738 = vmatprep.subr.bf16.mxu0 %v3994_v17  ;;  %v3997_v12 = vld [vmem:[%s5469_s7 + $0x10] sm:$0xff]   ;;  %v3998_v63 = vld [vmem:[%s5469_s7 + $0x8] sm:$0xff]  }
 0x267   : > { %v2267_v55 = vpop.f32.mrf.mxu0  ;;  %3719 = vmatmul.mubr.bf16.vlgmr.msra.gmra.mxu1 %v2364_v21  ;;  %v3995_v21 = vld [vmem:[%s5469_s7 + $0x20] sm:$0xff]  }
 0x268   : > { %v2268_v34 = vadd.f32 %v2267_v55, %v2171_v42  ;;  %v2334_v38 = vmax.f32 %v2276_v3, 0.0  ;;  %3774 = vmatpush3.bf16.msra.mxu1 %v3992_v5  ;;  %v3999_v3 = vld [vmem:[%s5469_s7] sm:$0xff]  }
 0x269   : > { %v3696_v61 = vpop.f32.mrf.mxu0  ;;  %3767 = vmatprep.subr.bf16.mxu1 %v3993_v39  ;;  %3739 = vmatpush3.bf16.msra.mxu0 %v3994_v17 }
 0x26a   : > { %v2328_v28 = vmax.f32 %v2268_v34, 0.0  ;;  %v2370_v37 = vpack.c.bf16 %v2334_v38, %v2331_v58  ;;  %v2289_v15 = vadd.f32 %v3696_v61, %v2192_v25  ;;  %3740 = vmatprep.subr.bf16.mxu0 %v3995_v21 }
 0x26b   : > { %v2280_v54 = vpop.f32.mrf.mxu0 }
 0x26c   : > { %v2367_v13 = vpack.c.bf16 %v2328_v28, %v2325_v27  ;;  %v2281_v40 = vadd.f32 %v2280_v54, %v2184_v22  ;;  %v2343_v59 = vmax.f32 %v2289_v15, 0.0  ;;  %3775 = vmatpush3.bf16.msra.mxu1 %v3993_v39 }
 0x26d   : > { %v3697_v35 = vpop.f32.mrf.mxu0  ;;  %3768 = vmatprep.subr.bf16.mxu1 %v3994_v17  ;;  %3741 = vmatpush3.bf16.msra.mxu0 %v3995_v21 }
 0x26e   : > { %v2292_v52 = vadd.f32 %v3697_v35, %v2195_v2  ;;  %3722 = vmatprep.mubr.bf16.mxu1 %v2367_v13  ;;  %v2337_v48 = vmax.f32 %v2281_v40, 0.0  ;;  %3742 = vmatprep.subr.bf16.mxu0 %v3996_v24 }
 0x26f   : > { %v2283_v60 = vpop.f32.mrf.mxu0  ;;  %3723 = vmatmul.mubr.bf16.gmra.mxu1 %v2370_v37 }
 0x270   : > { %v2284_v43 = vadd.f32 %v2283_v60, %v2187_v11  ;;  %v2346_v62 = vmax.f32 %v2292_v52, 0.0  ;;  %3776 = vmatpush3.bf16.msra.mxu1 %v3994_v17 }
 0x271   : > { %v3700_v31 = vpop.f32.mrf.mxu0  ;;  %3769 = vmatprep.subr.bf16.mxu1 %v3995_v21  ;;  %3743 = vmatpush3.bf16.msra.mxu0 %v3996_v24 }
 0x272   : > { %v2340_v19 = vmax.f32 %v2284_v43, 0.0  ;;  %v2376_v41 = vpack.c.bf16 %v2346_v62, %v2343_v59  ;;  %v2305_v18 = vadd.f32 %v3700_v31, %v2208_v10  ;;  %3744 = vmatprep.subr.bf16.mxu0 %v3997_v12 }
 0x273   : > { %v2296_v6 = vpop.f32.mrf.mxu0 }
 0x274   : > { %v2373_v14 = vpack.c.bf16 %v2340_v19, %v2337_v48  ;;  %v2297_v8 = vadd.f32 %v2296_v6, %v2200_v45  ;;  %v2355_v1 = vmax.f32 %v2305_v18, 0.0  ;;  %3777 = vmatpush3.bf16.msra.mxu1 %v3995_v21 }
 0x275   : > { %v3701_v0 = vpop.f32.mrf.mxu0  ;;  %3770 = vmatprep.subr.bf16.mxu1 %v3996_v24  ;;  %3745 = vmatpush3.bf16.msra.mxu0 %v3997_v12 }
 0x276   : > { %v2308_v44 = vadd.f32 %v3701_v0, %v2211_v20  ;;  %3726 = vmatprep.mubr.bf16.mxu1 %v2373_v14  ;;  %v2349_v56 = vmax.f32 %v2297_v8, 0.0  ;;  %3746 = vmatprep.subr.bf16.mxu0 %v3998_v63 }
 0x277   : > { %v2299_v50 = vpop.f32.mrf.mxu0  ;;  %3727 = vmatmul.mubr.bf16.gmra.mxu1 %v2376_v41 }
 0x278   : > { %v2300_v53 = vadd.f32 %v2299_v50, %v2203_v23  ;;  %v2358_v32 = vmax.f32 %v2308_v44, 0.0  ;;  %3778 = vmatpush3.bf16.msra.mxu1 %v3996_v24 }
 0x279   : > { %3771 = vmatprep.subr.bf16.mxu1 %v3997_v12  ;;  %3747 = vmatpush3.bf16.msra.mxu0 %v3998_v63 }
 0x27a   : > { %v2352_v47 = vmax.f32 %v2300_v53, 0.0  ;;  %v2382_v26 = vpack.c.bf16 %v2358_v32, %v2355_v1  ;;  %3748 = vmatprep.subr.bf16.mxu0 %v3999_v3 }
 0x27c   : > { %v2379_v57 = vpack.c.bf16 %v2352_v47, %v2349_v56  ;;  %3779 = vmatpush3.bf16.msra.mxu1 %v3997_v12 }
 0x27d   : > { %3772 = vmatprep.subr.bf16.mxu1 %v3998_v63  ;;  %3749 = vmatpush3.bf16.msra.mxu0 %v3999_v3 }
 0x27e   : > { %3730 = vmatprep.mubr.bf16.mxu1 %v2379_v57 }
 0x27f   : > { %3731 = vmatmul.mubr.bf16.gmra.mxu1 %v2382_v26 }
 0x280   : > { %3780 = vmatpush3.bf16.msra.mxu1 %v3998_v63 }
 0x281   : > { %3773 = vmatprep.subr.bf16.mxu1 %v3999_v3 }
 0x284   : > { %3781 = vmatpush3.bf16.msra.mxu1 %v3999_v3 }
 0x2e7   : > { %v3566_v42 = vpop.f32.mrf.mxu0 }
 0x2e9   : > { %v3567_v7 = vpop.f32.mrf.mxu0 }
 0x2ea   : > { %v3568_v60 = vadd.f32 %v3567_v7, %v3566_v42 }
 0x2eb   : > { %v3569_v55 = vpop.f32.mrf.mxu0 }
 0x2ec   : > { %v2617_v48 = vadd.f32 %v3568_v60, %v5310_v51 }
 0x2ed   : > { %v3570_v4 = vpop.f32.mrf.mxu0 }
 0x2ee   : > { %v3571_v31 = vadd.f32 %v3570_v4, %v3569_v55 }
 0x2ef   : > { %v3572_v33 = vpop.f32.mrf.mxu0 }
 0x2f0   : > { %v2620_v41 = vadd.f32 %v3571_v31, %v5310_v51 }
 0x2f1   : > { %v3573_v34 = vpop.f32.mrf.mxu0 }
 0x2f2   : > { %v3574_v9 = vadd.f32 %v3573_v34, %v3572_v33 }
 0x2f3   : > { %v3575_v30 = vpop.f32.mrf.mxu0 }
 0x2f4   : > { %v2625_v6 = vadd.f32 %v3574_v9, %v5310_v51 }
 0x2f5   : > { %v3576_v36 = vpop.f32.mrf.mxu0 }
 0x2f6   : > { %v3577_v29 = vadd.f32 %v3576_v36, %v3575_v30 }
 0x2f7   : > { %v3578_v38 = vpop.f32.mrf.mxu0 }
 0x2f8   : > { %v2628_v19 = vadd.f32 %v3577_v29, %v5310_v51 }
 0x2f9   : > { %v3579_v61 = vpop.f32.mrf.mxu0 }
 0x2fa   : > { %v3580_v8 = vadd.f32 %v3579_v61, %v3578_v38 }
 0x2fb   : > { %v3581_v46 = vpop.f32.mrf.mxu0 }
 0x2fc   : > { %v2633_v39 = vadd.f32 %v3580_v8, %v5310_v51 }
 0x2fd   : > { %v3582_v27 = vpop.f32.mrf.mxu0 }
 0x2fe   : > { %v3583_v32 = vadd.f32 %v3582_v27, %v3581_v46 }
 0x2ff   : > { %v3584_v28 = vpop.f32.mrf.mxu0 }
 0x300   : > { %v2636_v7 = vadd.f32 %v3583_v32, %v5310_v51 }
 0x301   : > { %v3585_v58 = vpop.f32.mrf.mxu0 }
 0x302   : > { %v3586_v18 = vadd.f32 %v3585_v58, %v3584_v28 }
 0x303   : > { %v3587_v54 = vpop.f32.mrf.mxu0 }
 0x304   : > { %v2641_v12 = vadd.f32 %v3586_v18, %v5310_v51 }
 0x305   : > { %v3588_v13 = vpop.f32.mrf.mxu0 }
 0x306   : > { %v3589_v44 = vadd.f32 %v3588_v13, %v3587_v54 }
 0x307   : > { %v3590_v22 = vpop.f32.mrf.mxu0 }
 0x308   : > { %v2644_v17 = vadd.f32 %v3589_v44, %v5310_v51 }
 0x309   : > { %v3591_v2 = vpop.f32.mrf.mxu0 }
 0x30a   : > { %v3592_v33 = vadd.f32 %v3591_v2, %v3590_v22 }
 0x30b   : > { %v3593_v49 = vpop.f32.mrf.mxu0 }
 0x30c   : > { %v2649_v29 = vadd.f32 %v3592_v33, %v5310_v51 }
 0x30d   : > { %v3594_v37 = vpop.f32.mrf.mxu0 }
 0x30e   : > { %v3595_v27 = vadd.f32 %v3594_v37, %v3593_v49 }
 0x30f   : > { %v3596_v25 = vpop.f32.mrf.mxu0 }
 0x311   : > { %v3597_v35 = vpop.f32.mrf.mxu0 }
 0x312   : > { %v3598_v36 = vadd.f32 %v3597_v35, %v3596_v25  ;;  %v2652_v35 = vadd.f32 %v3595_v27, %v5310_v51 }
 0x313   : > { %v3599_v40 = vpop.f32.mrf.mxu0 }
 0x314   : > { %v2657_v22 = vadd.f32 %v3598_v36, %v5310_v51 }
 0x315   : > { %v3600_v52 = vpop.f32.mrf.mxu0 }
 0x316   : > { %v3601_v34 = vadd.f32 %v3600_v52, %v3599_v40 }
 0x317   : > { %v5301_v11 = vpop.f32.mrf.mxu0 }
 0x318   : > { %v2660_v9 = vadd.f32 %v3601_v34, %v5310_v51 }
 0x319   : > { %v5303_v15 = vpop.f32.mrf.mxu0 }
 0x31a   : > { %v3604_v52 = vadd.f32 %v5303_v15, %v5301_v11 }
 0x31b   : > { %v5305_v43 = vpop.f32.mrf.mxu0 }
 0x31c   : > { %v2665_v44 = vadd.f32 %v3604_v52, %v5310_v51 }
 0x31d   : > { %v5314_v59 = vpop.f32.mrf.mxu0 }
 0x31f   : > { %v3608_v50 = vpop.f32.mrf.mxu0 }
 0x321   : > { %v3609_v21 = vpop.f32.mrf.mxu0 }
 0x323   : > { %v3611_v38 = vpop.f32.mrf.mxu0 }
 0x327   : > { %v3720_v62 = vpop.f32.mrf.mxu1 }
 0x328   : > { %v2722_v10 = vadd.f32 %v3720_v62, %v2625_v6  ;;  %v3612_v62 = vpop.f32.mrf.mxu0 }
 0x329   : > { %v2713_v16 = vpop.f32.mrf.mxu1 }
 0x32a   : > { %v2714_v45 = vadd.f32 %v2713_v16, %v2617_v48  ;;  %v2778_v1 = vmax.f32 %v2722_v10, 0.0  ;;  %v3613_v16 = vadd.f32 %v3612_v62, %v3611_v38 }
 0x32b   : > { %v3721_v14 = vpop.f32.mrf.mxu1 }
 0x32c   : > { %v2725_v20 = vadd.f32 %v3721_v14, %v2628_v19  ;;  %v2776_v56 = vmax.f32 %v2714_v45, 0.0  ;;  %v3610_v19 = vadd.f32 %v3609_v21, %v3608_v50  ;;  %v3607_v45 = vadd.f32 %v5314_v59, %v5305_v43 }
 0x32d   : > { %v2716_v0 = vpop.f32.mrf.mxu1 }
 0x32e   : > { %v2717_v23 = vadd.f32 %v2716_v0, %v2620_v41  ;;  %v2779_v5 = vmax.f32 %v2725_v20, 0.0  ;;  %v2673_v11 = vadd.f32 %v3610_v19, %v5310_v51 }
 0x32f   : > { %v3724_v53 = vpop.f32.mrf.mxu1 }
 0x330   : > { %v2777_v47 = vmax.f32 %v2717_v23, 0.0  ;;  %v2793_v24 = vpack.c.bf16 %v2779_v5, %v2778_v1  ;;  %v2738_v55 = vadd.f32 %v3724_v53, %v2641_v12  ;;  %v2676_v23 = vadd.f32 %v3613_v16, %v5310_v51 }
 0x331   : > { %v2729_v57 = vpop.f32.mrf.mxu1  ;;  %v2668_v53 = vadd.f32 %v3607_v45, %v5310_v51 }
 0x332   : > { %v2792_v26 = vpack.c.bf16 %v2777_v47, %v2776_v56  ;;  %v2730_v3 = vadd.f32 %v2729_v57, %v2633_v39  ;;  %v2782_v54 = vmax.f32 %v2738_v55, 0.0 }
 0x333   : > { %v3725_v63 = vpop.f32.mrf.mxu1 }
 0x334   : > { %v2741_v42 = vadd.f32 %v3725_v63, %v2644_v17  ;;  %3750 = vmatprep.mubr.bf16.mxu0 %v2792_v26  ;;  %v2780_v28 = vmax.f32 %v2730_v3, 0.0  ;;  %v3383_v17 = vld [vmem:[%s5470_s8] ss:$0 sm:$0xff] }
 0x335   : > { %v2732_v4 = vpop.f32.mrf.mxu1  ;;  %3751 = vmatmul.mubr.bf16.vlgmr.msra.gmra.mxu0 %v2793_v24 }
 0x336   : > { %v2733_v30 = vadd.f32 %v2732_v4, %v2636_v7  ;;  %v2783_v61 = vmax.f32 %v2741_v42, 0.0 }
 0x337   : > { %v3728_v46 = vpop.f32.mrf.mxu1 }
 0x338   : > { %v2781_v58 = vmax.f32 %v2733_v30, 0.0  ;;  %v2795_v31 = vpack.c.bf16 %v2783_v61, %v2782_v54  ;;  %v2754_v49 = vadd.f32 %v3728_v46, %v2657_v22 }
 0x339   : > { %v2745_v13 = vpop.f32.mrf.mxu1 }
 0x33a   : > { %v2794_v60 = vpack.c.bf16 %v2781_v58, %v2780_v28  ;;  %v2746_v40 = vadd.f32 %v2745_v13, %v2649_v29  ;;  %v2786_v10 = vmax.f32 %v2754_v49, 0.0 }
 0x33b   : > { %v3729_v2 = vpop.f32.mrf.mxu1 }
 0x33c   : > { %v2757_v25 = vadd.f32 %v3729_v2, %v2660_v9  ;;  %3754 = vmatprep.mubr.bf16.mxu1 %v2794_v60  ;;  %v2784_v20 = vmax.f32 %v2746_v40, 0.0 }
 0x33d   : > { %v2748_v37 = vpop.f32.mrf.mxu1  ;;  %3755 = vmatmul.mubr.bf16.vlgmr.msra.gmra.mxu1 %v2795_v31 }
 0x33e   : > { %v2749_v48 = vadd.f32 %v2748_v37, %v2652_v35  ;;  %v2787_v6 = vmax.f32 %v2757_v25, 0.0 }
 0x33f   : > { %v3732_v14 = vpop.f32.mrf.mxu1 }
 0x340   : > { %v2785_v41 = vmax.f32 %v2749_v48, 0.0  ;;  %v2797_v18 = vpack.c.bf16 %v2787_v6, %v2786_v10  ;;  %v2770_v32 = vadd.f32 %v3732_v14, %v2673_v11 }
 0x341   : > { %v2761_v0 = vpop.f32.mrf.mxu1 }
 0x342   : > { %v2796_v8 = vpack.c.bf16 %v2785_v41, %v2784_v20  ;;  %v2762_v5 = vadd.f32 %v2761_v0, %v2665_v44  ;;  %v2790_v57 = vmax.f32 %v2770_v32, 0.0 }
 0x343   : > { %v3733_v15 = vpop.f32.mrf.mxu1 }
 0x344   : > { %v2773_v50 = vadd.f32 %v3733_v15, %v2676_v23  ;;  %3758 = vmatprep.mubr.bf16.mxu1 %v2796_v8  ;;  %v2788_v47 = vmax.f32 %v2762_v5, 0.0 }
 0x345   : > { %v2764_v43 = vpop.f32.mrf.mxu1  ;;  %3759 = vmatmul.mubr.bf16.gmra.mxu1 %v2797_v18 }
 0x346   : > { %v2765_v59 = vadd.f32 %v2764_v43, %v2668_v53  ;;  %v2791_v56 = vmax.f32 %v2773_v50, 0.0 }
 0x348   : > { %v2789_v1 = vmax.f32 %v2765_v59, 0.0  ;;  %v2799_v39 = vpack.c.bf16 %v2791_v56, %v2790_v57 }
 0x34a   : > { %v2798_v26 = vpack.c.bf16 %v2789_v1, %v2788_v47 }
 0x34c   : > { %3762 = vmatprep.mubr.bf16.mxu1 %v2798_v26 }
 0x34d   : > { %3763 = vmatmul.mubr.bf16.gmra.mxu1 %v2799_v39 }
 0x3f5   : > { %v3752_v21 = vpop.f32.mrf.mxu0 }
 0x3f6   : > { %v2914_v24 = vadd.f32 %v3752_v21, %v3383_v17 }
 0x3f7   : > { %v2905_v12 = vpop.f32.mrf.mxu0 }
 0x3f8   : > { %v2906_v51 = vadd.f32 %v3383_v17, %v2905_v12  ;;  %2972 = vmax.xlane.f32.xlu1 %v2914_v24 }
 0x3f9   : > { %v3753_v63 = vpop.f32.mrf.mxu0 }
 0x3fa   : > { %v2917_v3 = vadd.f32 %v3753_v63, %v3383_v17  ;;  %2968 = vmax.xlane.f32.xlu0 %v2906_v51 }
 0x3fb   : > { %v2908_v42 = vpop.f32.mrf.mxu0 }
 0x3fc   : > { %v2909_v7 = vadd.f32 %v3383_v17, %v2908_v42  ;;  %2974 = vmax.xlane.f32.xlu1 %v2917_v3 }
 0x3fd   : > { %v3756_v55 = vpop.f32.mrf.mxu1 }
 0x3fe   : > { %2970 = vmax.xlane.f32.xlu0 %v2909_v7  ;;  %v2930_v33 = vadd.f32 %v3756_v55, %v3383_v17 }
 0x3ff   : > { %v2921_v4 = vpop.f32.mrf.mxu1 }
 0x400   : > { %v2922_v38 = vadd.f32 %v3383_v17, %v2921_v4 }
 0x401   : > { %v3757_v34 = vpop.f32.mrf.mxu1 }
 0x402   : > { %v2933_v30 = vadd.f32 %v3757_v34, %v3383_v17  ;;  %2980 = vmax.xlane.f32.xlu0 %v2930_v33 }
 0x403   : > { %v2924_v36 = vpop.f32.mrf.mxu1 }
 0x404   : > { %2982 = vmax.xlane.f32.xlu1 %v2933_v30  ;;  %v2925_v46 = vadd.f32 %v3383_v17, %v2924_v36 }
 0x405   : > { %v3760_v61 = vpop.f32.mrf.mxu1 }
 0x406   : > { %2976 = vmax.xlane.f32.xlu0 %v2922_v38  ;;  %v2946_v28 = vadd.f32 %v3760_v61, %v3383_v17 }
 0x407   : > { %v2937_v27 = vpop.f32.mrf.mxu1 }
 0x408   : > { %2978 = vmax.xlane.f32.xlu1 %v2925_v46  ;;  %v2938_v60 = vadd.f32 %v3383_v17, %v2937_v27 }
 0x409   : > { %v3761_v58 = vpop.f32.mrf.mxu1 }
 0x40a   : > { %v2949_v54 = vadd.f32 %v3761_v58, %v3383_v17  ;;  %2988 = vmax.xlane.f32.xlu0 %v2946_v28 }
 0x40b   : > { %v2940_v13 = vpop.f32.mrf.mxu1 }
 0x40c   : > { %2990 = vmax.xlane.f32.xlu1 %v2949_v54  ;;  %v5337_v9 = vadd.f32 %v3383_v17, %v2940_v13 }
 0x40d   : > { %v3764_v29 = vpop.f32.mrf.mxu1 }
 0x40e   : > { %2984 = vmax.xlane.f32.xlu0 %v2938_v60  ;;  %v5343_v40 = vadd.f32 %v3764_v29, %v3383_v17 }
 0x40f   : > { %v2953_v62 = vpop.f32.mrf.mxu1 }
 0x410   : > { %v5339_v31 = vadd.f32 %v3383_v17, %v2953_v62  ;;  %2986 = vmax.xlane.f32.xlu1 %v5337_v9 }
 0x411   : > { %v3765_v22 = vpop.f32.mrf.mxu1 }
 0x412   : > { %2992 = vmax.xlane.f32.xlu0 %v5339_v31  ;;  %v5349_v35 = vadd.f32 %v3765_v22, %v3383_v17 }
 0x413   : > { %v2956_v2 = vpop.f32.mrf.mxu1 }
 0x414   : > { %v5345_v25 = vadd.f32 %v3383_v17, %v2956_v2 }
 0x416   : > { %2994 = vmax.xlane.f32.xlu1 %v5345_v25  ;;  %2996 = vmax.xlane.f32.xlu0 %v5343_v40 }
 0x41a   : > { %2998 = vmax.xlane.f32.xlu1 %v5349_v35 }
 0x481   : > { %v2973_v49 = vpop.xlane.xlu1 %2972 }
 0x482   : > { %v5352_v37 = vsub.f32 %v2914_v24, %v2973_v49 }
 0x483   : > { %v2969_v52 = vpop.xlane.xlu0 %2968 }
 0x484   : > { %v3020_v16 = vmul.f32 1.442695, %v5352_v37  ;;  %v5355_v48 = vsub.f32 %v2906_v51, %v2969_v52 }
 0x485   : > { %v2975_v19 = vpop.xlane.xlu1 %2974 }
 0x486   : > { %4000 = vpow2.f32 %v3020_v16  ;;  %v3016_v6 = vmul.f32 1.442695, %v5355_v48  ;;  %v5358_v14 = vsub.f32 %v2917_v3, %v2975_v19 }
 0x487   : > { %v2971_v45 = vpop.xlane.xlu0 %2970 }
 0x488   : > { %v3022_v20 = vmul.f32 1.442695, %v5358_v14  ;;  %v5361_v41 = vsub.f32 %v2909_v7, %v2971_v45  ;;  %4002 = vpow2.f32 %v3016_v6 }
 0x48a   : > { %4004 = vpow2.f32 %v3022_v20  ;;  %v3018_v10 = vmul.f32 1.442695, %v5361_v41 }
 0x48b   : > { %v2981_v0 = vpop.xlane.xlu0 %2980 }
 0x48c   : > { %v5364_v8 = vsub.f32 %v2930_v33, %v2981_v0  ;;  %4006 = vpow2.f32 %v3018_v10 }
 0x48d   : > { %v2983_v44 = vpop.xlane.xlu1 %2982 }
 0x48e   : > { %v3028_v23 = vmul.f32 1.442695, %v5364_v8  ;;  %v5367_v18 = vsub.f32 %v2933_v30, %v2983_v44 }
 0x48f   : > { %v2977_v11 = vpop.xlane.xlu0 %2976 }
 0x490   : > { %4008 = vpow2.f32 %v3028_v23  ;;  %v3030_v15 = vmul.f32 1.442695, %v5367_v18  ;;  %v5370_v5 = vsub.f32 %v2922_v38, %v2977_v11 }
 0x491   : > { %v2979_v50 = vpop.xlane.xlu1 %2978 }
 0x492   : > { %4010 = vpow2.f32 %v3030_v15  ;;  %v3024_v53 = vmul.f32 1.442695, %v5370_v5  ;;  %v5373_v32 = vsub.f32 %v2925_v46, %v2979_v50 }
 0x493   : > { %v4001_v43 = vpop.eup %4000  ;;  %v2989_v59 = vpop.xlane.xlu0 %2988 }
 0x494   : > { %4012 = vpow2.f32 %v3024_v53  ;;  %v3026_v56 = vmul.f32 1.442695, %v5373_v32  ;;  %v5376_v47 = vsub.f32 %v2946_v28, %v2989_v59  ;;  %3052 = vadd.xlane.f32.xlu0 %v4001_v43 }
 0x495   : > { %v2991_v1 = vpop.xlane.xlu1 %2990  ;;  %v4003_v57 = vpop.eup %4002 }
 0x496   : > { %4014 = vpow2.f32 %v3026_v56  ;;  %v3036_v26 = vmul.f32 1.442695, %v5376_v47  ;;  %v5379_v39 = vsub.f32 %v2949_v54, %v2991_v1 }
 0x497   : > { %v4005_v17 = vpop.eup %4004  ;;  %v2985_v21 = vpop.xlane.xlu0 %2984 }
 0x498   : > { %4016 = vpow2.f32 %v3036_v26  ;;  %v3038_v24 = vmul.f32 1.442695, %v5379_v39  ;;  %v5382_v12 = vsub.f32 %v2938_v60, %v2985_v21  ;;  %3054 = vadd.xlane.f32.xlu1 %v4005_v17  ;;  %3048 = vadd.xlane.f32.xlu0 %v4003_v57 }
 0x499   : > { %v2987_v51 = vpop.xlane.xlu1 %2986  ;;  %v4007_v42 = vpop.eup %4006 }
 0x49a   : > { %4018 = vpow2.f32 %v3038_v24  ;;  %v3032_v63 = vmul.f32 1.442695, %v5382_v12  ;;  %v5386_v3 = vsub.f32 %v5337_v9, %v2987_v51 }
 0x49b   : > { %v2993_v7 = vpop.xlane.xlu0 %2992 }
 0x49c   : > { %4020 = vpow2.f32 %v3032_v63  ;;  %v3034_v55 = vmul.f32 1.442695, %v5386_v3  ;;  %v5390_v4 = vsub.f32 %v5339_v31, %v2993_v7  ;;  %3050 = vadd.xlane.f32.xlu1 %v4007_v42 }
 0x49d   : > { %v4009_v33 = vpop.eup %4008 }
 0x49e   : > { %4022 = vpow2.f32 %v3034_v55  ;;  %v3040_v34 = vmul.f32 1.442695, %v5390_v4  ;;  %3060 = vadd.xlane.f32.xlu0 %v4009_v33 }
 0x49f   : > { %v4011_v30 = vpop.eup %4010  ;;  %v2995_v36 = vpop.xlane.xlu1 %2994 }
 0x4a0   : > { %v2997_v38 = vpop.xlane.xlu0 %2996  ;;  %4024 = vpow2.f32 %v3040_v34  ;;  %v5394_v61 = vsub.f32 %v5345_v25, %v2995_v36  ;;  %3062 = vadd.xlane.f32.xlu1 %v4011_v30 }
 0x4a1   : > { %v5397_v46 = vsub.f32 %v5343_v40, %v2997_v38  ;;  %v4013_v27 = vpop.eup %4012 }
 0x4a2   : > { %v3042_v28 = vmul.f32 1.442695, %v5394_v61  ;;  %3056 = vadd.xlane.f32.xlu0 %v4013_v27 }
 0x4a3   : > { %v3044_v58 = vmul.f32 1.442695, %v5397_v46  ;;  %v4015_v54 = vpop.eup %4014  ;;  %v2999_v13 = vpop.xlane.xlu1 %2998 }
 0x4a4   : > { %4026 = vpow2.f32 %v3042_v28  ;;  %v5402_v60 = vsub.f32 %v5349_v35, %v2999_v13  ;;  %3058 = vadd.xlane.f32.xlu1 %v4015_v54 }
 0x4a5   : > { %v4017_v29 = vpop.eup %4016  ;;  %4028 = vpow2.f32 %v3044_v58 }
 0x4a6   : > { %v3046_v9 = vmul.f32 1.442695, %v5402_v60  ;;  %3068 = vadd.xlane.f32.xlu0 %v4017_v29 }
 0x4a7   : > { %v4019_v62 = vpop.eup %4018 }
 0x4a8   : > { %4030 = vpow2.f32 %v3046_v9  ;;  %3070 = vadd.xlane.f32.xlu1 %v4019_v62 }
 0x4a9   : > { %v4021_v31 = vpop.eup %4020 }
 0x4aa   : > { %3064 = vadd.xlane.f32.xlu0 %v4021_v31 }
 0x4ab   : > { %v4023_v22 = vpop.eup %4022 }
 0x4ac   : > { %3066 = vadd.xlane.f32.xlu1 %v4023_v22 }
 0x4ad   : > { %v4025_v2 = vpop.eup %4024 }
 0x4ae   : > { %3072 = vadd.xlane.f32.xlu0 %v4025_v2 }
 0x4b1   : > { %v4027_v40 = vpop.eup %4026 }
 0x4b2   : > { %v4029_v25 = vpop.eup %4028  ;;  %3074 = vadd.xlane.f32.xlu1 %v4027_v40 }
 0x4b3   : > { %3076 = vadd.xlane.f32.xlu0 %v4029_v25 }
 0x4b5   : > { %v4031_v35 = vpop.eup %4030 }
 0x4b6   : > { %3078 = vadd.xlane.f32.xlu1 %v4031_v35 }
 0x51d   : > { %v3053_v49 = vpop.xlane.xlu0 %3052 }
 0x51e   : > { %4032 = vlog2.f32 %v3053_v49 }
 0x521   : > { %v3055_v52 = vpop.xlane.xlu1 %3054  ;;  %v3049_v16 = vpop.xlane.xlu0 %3048 }
 0x522   : > { %4034 = vlog2.f32 %v3055_v52 }
 0x523   : > { %4036 = vlog2.f32 %v3049_v16 }
 0x525   : > { %v3051_v19 = vpop.xlane.xlu1 %3050 }
 0x526   : > { %4038 = vlog2.f32 %v3051_v19 }
 0x527   : > { %v3061_v6 = vpop.xlane.xlu0 %3060 }
 0x528   : > { %4040 = vlog2.f32 %v3061_v6 }
 0x529   : > { %v3063_v45 = vpop.xlane.xlu1 %3062 }
 0x52a   : > { %4042 = vlog2.f32 %v3063_v45 }
 0x52b   : > { %v4033_v20 = vpop.eup %4032  ;;  %v3057_v10 = vpop.xlane.xlu0 %3056 }
 0x52c   : > { %v3085_v0 = vmul.f32 0.6931472, %v4033_v20  ;;  %4044 = vlog2.f32 %v3057_v10 }
 0x52d   : > { %v3059_v44 = vpop.xlane.xlu1 %3058 }
 0x52e   : > { %v3114_v23 = vsub.f32 %v5352_v37, %v3085_v0  ;;  %4046 = vlog2.f32 %v3059_v44 }
 0x52f   : > { %v4035_v11 = vpop.eup %4034  ;;  %v3069_v15 = vpop.xlane.xlu0 %3068 }
 0x530   : > { %v4037_v50 = vpop.eup %4036  ;;  %3131 = vst.msk [vmem:[%s5409_s12 + $0x10] sm:$0xff] %vm3128_vm1, %v3114_v23  ;;  %v3087_v53 = vmul.f32 0.6931472, %v4035_v11  ;;  %4048 = vlog2.f32 %v3069_v15 }
 0x531   : > { %v3081_v43 = vmul.f32 0.6931472, %v4037_v50  ;;  %v3071_v59 = vpop.xlane.xlu1 %3070 }
 0x532   : > { %v3115_v56 = vsub.f32 %v5358_v14, %v3087_v53  ;;  %4050 = vlog2.f32 %v3071_v59 }
 0x533   : > { %v4039_v1 = vpop.eup %4038  ;;  %v3112_v57 = vsub.f32 %v5355_v48, %v3081_v43  ;;  %v3065_v26 = vpop.xlane.xlu0 %3064 }
 0x534   : > { %3132 = vst.msk [vmem:[%s5409_s12 + $0x18] sm:$0xff] %vm3128_vm1, %v3115_v56  ;;  %v3083_v37 = vmul.f32 0.6931472, %v4039_v1  ;;  %4052 = vlog2.f32 %v3065_v26 }
 0x535   : > { %v4041_v17 = vpop.eup %4040  ;;  %3129 = vst.msk [vmem:[%s5409_s12] sm:$0xff] %vm3128_vm1, %v3112_v57  ;;  %v3067_v21 = vpop.xlane.xlu1 %3066 }
 0x536   : > { %v3113_v24 = vsub.f32 %v5361_v41, %v3083_v37  ;;  %v3093_v51 = vmul.f32 0.6931472, %v4041_v17  ;;  %4054 = vlog2.f32 %v3067_v21 }
 0x537   : > { %v4043_v14 = vpop.eup %4042  ;;  %v3073_v63 = vpop.xlane.xlu0 %3072 }
 0x538   : > { %3130 = vst.msk [vmem:[%s5409_s12 + $0x8] sm:$0xff] %vm3128_vm1, %v3113_v24  ;;  %v3118_v48 = vsub.f32 %v5364_v8, %v3093_v51  ;;  %v3095_v42 = vmul.f32 0.6931472, %v4043_v14  ;;  %4056 = vlog2.f32 %v3073_v63 }
 0x539   : > { %v4045_v7 = vpop.eup %4044 }
 0x53a   : > { %3135 = vst.msk [vmem:[%s5409_s12 + $0x30] sm:$0xff] %vm3128_vm1, %v3118_v48  ;;  %v3119_v55 = vsub.f32 %v5367_v18, %v3095_v42  ;;  %v3089_v33 = vmul.f32 0.6931472, %v4045_v7 }
 0x53b   : > { %v4047_v34 = vpop.eup %4046  ;;  %v3075_v41 = vpop.xlane.xlu1 %3074 }
 0x53c   : > { %3136 = vst.msk [vmem:[%s5409_s12 + $0x38] sm:$0xff] %vm3128_vm1, %v3119_v55  ;;  %v3116_v30 = vsub.f32 %v5370_v5, %v3089_v33  ;;  %v3091_v36 = vmul.f32 0.6931472, %v4047_v34  ;;  %4058 = vlog2.f32 %v3075_v41  ;;  %v3077_v8 = vpop.xlane.xlu0 %3076 }
 0x53d   : > { %v4049_v38 = vpop.eup %4048  ;;  %4060 = vlog2.f32 %v3077_v8 }
 0x53e   : > { %3133 = vst.msk [vmem:[%s5409_s12 + $0x20] sm:$0xff] %vm3128_vm1, %v3116_v30  ;;  %v3117_v27 = vsub.f32 %v5373_v32, %v3091_v36  ;;  %v3101_v18 = vmul.f32 0.6931472, %v4049_v38 }
 0x53f   : > { %v4051_v28 = vpop.eup %4050  ;;  %v3079_v58 = vpop.xlane.xlu1 %3078 }
 0x540   : > { %3134 = vst.msk [vmem:[%s5409_s12 + $0x28] sm:$0xff] %vm3128_vm1, %v3117_v27  ;;  %v3122_v5 = vsub.f32 %v5376_v47, %v3101_v18  ;;  %v3103_v54 = vmul.f32 0.6931472, %v4051_v28  ;;  %4062 = vlog2.f32 %v3079_v58 }
 0x541   : > { %v4053_v13 = vpop.eup %4052 }
 0x542   : > { %3139 = vst.msk [vmem:[%s5409_s12 + $0x50] sm:$0xff] %vm3128_vm1, %v3122_v5  ;;  %v3123_v29 = vsub.f32 %v5379_v39, %v3103_v54  ;;  %v3097_v9 = vmul.f32 0.6931472, %v4053_v13 }
 0x543   : > { %v4055_v62 = vpop.eup %4054 }
 0x544   : > { %3140 = vst.msk [vmem:[%s5409_s12 + $0x58] sm:$0xff] %vm3128_vm1, %v3123_v29  ;;  %v3120_v32 = vsub.f32 %v5382_v12, %v3097_v9  ;;  %v3099_v31 = vmul.f32 0.6931472, %v4055_v62 }
 0x545   : > { %v4057_v22 = vpop.eup %4056 }
 0x546   : > { %3137 = vst.msk [vmem:[%s5409_s12 + $0x40] sm:$0xff] %vm3128_vm1, %v3120_v32  ;;  %v3121_v47 = vsub.f32 %v5386_v3, %v3099_v31  ;;  %v3105_v2 = vmul.f32 0.6931472, %v4057_v22 }
 0x548   : > { %3138 = vst.msk [vmem:[%s5409_s12 + $0x48] sm:$0xff] %vm3128_vm1, %v3121_v47  ;;  %v3124_v39 = vsub.f32 %v5390_v4, %v3105_v2 }
 0x549   : > { %v4059_v40 = vpop.eup %4058 }
 0x54a   : > { %v4061_v25 = vpop.eup %4060  ;;  %3141 = vst.msk [vmem:[%s5409_s12 + $0x60] sm:$0xff] %vm3128_vm1, %v3124_v39  ;;  %v3107_v35 = vmul.f32 0.6931472, %v4059_v40 }
 0x54b   : > { %v3109_v12 = vmul.f32 0.6931472, %v4061_v25 }
 0x54c   : > { %v3125_v49 = vsub.f32 %v5394_v61, %v3107_v35 }
 0x54d   : > { %v4063_v52 = vpop.eup %4062  ;;  %v3126_v16 = vsub.f32 %v5397_v46, %v3109_v12 }
 0x54e   : > { %3142 = vst.msk [vmem:[%s5409_s12 + $0x68] sm:$0xff] %vm3128_vm1, %v3125_v49  ;;  %v3111_v3 = vmul.f32 0.6931472, %v4063_v52 }
 0x54f   : > { %3143 = vst.msk [vmem:[%s5409_s12 + $0x70] sm:$0xff] %vm3128_vm1, %v3126_v16 }
 0x550   : > { %v3127_v19 = vsub.f32 %v5402_v60, %v3111_v3 }
 0x552   : > { %3144 = vst.msk [vmem:[%s5409_s12 + $0x78] sm:$0xff] %vm3128_vm1, %v3127_v19 }
 0x553 PF: > { %s19_s30 = sadd.s32 1, %s4070_s30  }
 0x554   : > { %p16_p4 = scmp.ge.s32.totalorder %s19_s30, 6  }
 0x556   :  { %18 = sbr.rel (!%p16_p4) target bundleno = 1 (0x1), region = 86 }

</bundles_post_ra>
